<compile_context>
chip_gen: v7x
topology: tpu7x:2x2x1
jax: 0.10.0
libtpu: 0.0.40
codegen_flags: <defaults>
</compile_context>

<pallas_src>
import math
import functools

import jax
import jax.numpy as jnp
from jax import lax
from jax.experimental import pallas as pl
from jax.experimental.pallas import tpu as pltpu


# ----------------------------------------------------------------------------
# Generic tiled linear (embedding / classifier)
# ----------------------------------------------------------------------------

def _pick_tile(dim, pref, align):
    """Largest tile <= pref that is a multiple of `align` and divides `dim`;
    falls back to the full dim (full-extent blocks are always legal)."""
    if dim <= pref:
        return dim
    t = (pref // align) * align
    while t >= align:
        if dim % t == 0:
            return t
        t -= align
    return dim


def _linear_kernel(x_ref, w_ref, b_ref, o_ref, acc_ref, *, scale, relu):
    k = pl.program_id(2)

    @pl.when(k == 0)
    def _():
        acc_ref[...] = jnp.zeros_like(acc_ref)

    acc_ref[...] += jnp.dot(
        x_ref[...].astype(jnp.bfloat16), w_ref[...],
        preferred_element_type=jnp.float32)

    @pl.when(k == pl.num_programs(2) - 1)
    def _():
        y = acc_ref[...] + b_ref[...]
        if scale != 1.0:
            y = y * scale
        if relu:
            y = jnp.maximum(y, 0.0)
        o_ref[...] = y


def pallas_linear(x, w, b, *, scale=1.0, relu=False,
                  tm_pref=256, tn_pref=256, tk_pref=512):
    """y = (x @ w + b) * scale (+ optional ReLU). x:(M,K) f32, w:(K,N) bf16."""
    M, K = x.shape
    N = w.shape[1]
    tm = _pick_tile(M, tm_pref, 8)
    tn = _pick_tile(N, tn_pref, 128)
    tk = _pick_tile(K, tk_pref, 128)
    grid = (M // tm, N // tn, K // tk)
    cost = pl.CostEstimate(
        flops=2 * M * N * K, transcendentals=0,
        bytes_accessed=x.size * 4 + w.size * 2 + b.size * 4 + M * N * 4)
    return pl.pallas_call(
        functools.partial(_linear_kernel, scale=scale, relu=relu),
        out_shape=jax.ShapeDtypeStruct((M, N), jnp.float32),
        grid=grid,
        in_specs=[
            pl.BlockSpec((tm, tk), lambda i, j, k: (i, k)),
            pl.BlockSpec((tk, tn), lambda i, j, k: (k, j)),
            pl.BlockSpec((1, tn), lambda i, j, k: (0, j)),
        ],
        out_specs=pl.BlockSpec((tm, tn), lambda i, j, k: (i, j)),
        scratch_shapes=[pltpu.VMEM((tm, tn), jnp.float32)],
        compiler_params=pltpu.CompilerParams(
            dimension_semantics=("parallel", "parallel", "arbitrary"),
            vmem_limit_bytes=32 * 1024 * 1024),
        cost_estimate=cost,
    )(x, w, b)


# ----------------------------------------------------------------------------
# Fused per-layer kernels (gridded over batch)
# ----------------------------------------------------------------------------

def _layernorm(z, g, beta, eps):
    mean = jnp.mean(z, axis=-1, keepdims=True)
    c = z - mean
    var = jnp.mean(c * c, axis=-1, keepdims=True)
    return c * lax.rsqrt(var + eps) * g + beta


def _attn_block_kernel(x_ref, wqkv_ref, bqkv_ref, wo_ref, bo_ref,
                       g_ref, beta_ref, o_ref, *, nhead, eps):
    """Per-batch: qkv-proj -> MHA -> out-proj -> residual add -> LayerNorm."""
    T, D = x_ref.shape
    Dh = D // nhead
    scale = 1.0 / math.sqrt(Dh)

    x = x_ref[...]                                                  # (T, D) f32
    qkv = jnp.dot(x.astype(jnp.bfloat16), wqkv_ref[...],
                  preferred_element_type=jnp.float32) + bqkv_ref[...]
    q = qkv[:, 0 * D:1 * D] * scale
    k = qkv[:, 1 * D:2 * D]
    v = qkv[:, 2 * D:3 * D]

    # Per-head attention; project each head with the matching 8-sublane-aligned
    # slice of W_out and accumulate in f32 (== concat(heads) @ W_out).
    proj = None
    for h in range(nhead):
        sl = slice(h * Dh, (h + 1) * Dh)
        qh = q[:, sl].astype(jnp.bfloat16)
        kh = k[:, sl].astype(jnp.bfloat16)
        vh = v[:, sl].astype(jnp.bfloat16)
        s = lax.dot_general(qh, kh, (((1,), (1,)), ((), ())),
                            preferred_element_type=jnp.float32)     # (T, T)
        m = jnp.max(s, axis=-1, keepdims=True)
        p = jnp.exp(s - m)
        l = jnp.sum(p, axis=-1, keepdims=True)
        oh = jnp.dot(p.astype(jnp.bfloat16), vh,
                     preferred_element_type=jnp.float32)            # (T, Dh)
        oh = oh * pl.reciprocal(l, approx=True)
        ph = jnp.dot(oh.astype(jnp.bfloat16), wo_ref[sl, :],
                     preferred_element_type=jnp.float32)            # (T, D)
        proj = ph if proj is None else proj + ph

    y = proj + bo_ref[...]
    o_ref[...] = _layernorm(x + y, g_ref[...], beta_ref[...], eps)


def _ffn_block_kernel(x_ref, w1_ref, b1_ref, w2_ref, b2_ref,
                      g_ref, beta_ref, o_ref, *, eps):
    """Per-batch: lin1 -> ReLU -> lin2 -> residual add -> LayerNorm.
    The (T, d_hid) intermediate stays in VMEM/vregs."""
    x = x_ref[...]                                                  # (T, D) f32
    h = jnp.dot(x.astype(jnp.bfloat16), w1_ref[...],
                preferred_element_type=jnp.float32) + b1_ref[...]
    h = jnp.maximum(h, 0.0)
    y = jnp.dot(h.astype(jnp.bfloat16), w2_ref[...],
                preferred_element_type=jnp.float32) + b2_ref[...]
    o_ref[...] = _layernorm(x + y, g_ref[...], beta_ref[...], eps)


def _bt_spec(T, D):
    return pl.BlockSpec((pl.Squeezed(), T, D), lambda b: (b, 0, 0))


def _rep_spec(shape):
    nd = len(shape)
    return pl.BlockSpec(shape, lambda b: (0,) * nd)


def pallas_attention_block(x, wqkv, bqkv, wo, bo, g, beta, *, nhead, eps=1e-5):
    B, T, D = x.shape
    return pl.pallas_call(
        functools.partial(_attn_block_kernel, nhead=nhead, eps=eps),
        out_shape=jax.ShapeDtypeStruct((B, T, D), jnp.float32),
        grid=(B,),
        in_specs=[
            _bt_spec(T, D),
            _rep_spec(wqkv.shape), _rep_spec(bqkv.shape),
            _rep_spec(wo.shape), _rep_spec(bo.shape),
            _rep_spec(g.shape), _rep_spec(beta.shape),
        ],
        out_specs=_bt_spec(T, D),
        compiler_params=pltpu.CompilerParams(
            dimension_semantics=("parallel",),
            vmem_limit_bytes=32 * 1024 * 1024),
    )(x, wqkv, bqkv, wo, bo, g, beta)


def pallas_ffn_block(x, w1, b1, w2, b2, g, beta, *, eps=1e-5):
    B, T, D = x.shape
    return pl.pallas_call(
        functools.partial(_ffn_block_kernel, eps=eps),
        out_shape=jax.ShapeDtypeStruct((B, T, D), jnp.float32),
        grid=(B,),
        in_specs=[
            _bt_spec(T, D),
            _rep_spec(w1.shape), _rep_spec(b1.shape),
            _rep_spec(w2.shape), _rep_spec(b2.shape),
            _rep_spec(g.shape), _rep_spec(beta.shape),
        ],
        out_specs=_bt_spec(T, D),
        compiler_params=pltpu.CompilerParams(
            dimension_semantics=("parallel",),
            vmem_limit_bytes=32 * 1024 * 1024),
    )(x, w1, b1, w2, b2, g, beta)


# ----------------------------------------------------------------------------
# Parameter construction (deterministic, synthetic)
# ----------------------------------------------------------------------------

def make_positional_encoding(d_model, max_len=500):
    position = jnp.arange(max_len, dtype=jnp.float32)[:, None]
    div_term = jnp.exp(jnp.arange(0, d_model, 2, dtype=jnp.float32)
                       * (-math.log(10000.0) / d_model))
    pe = jnp.zeros((max_len, 1, d_model), dtype=jnp.float32)
    pe = pe.at[:, 0, 0::2].set(jnp.sin(position * div_term))
    pe = pe.at[:, 0, 1::2].set(jnp.cos(position * div_term))
    return pe


def init_params(key, d_in, d_model, nhead, d_hid, nlayers, n_classes):
    initrange = 0.1
    ks = iter(jax.random.split(key, 3 + 4 * nlayers))

    def u(k, shape, rng):
        # weights stored (in, out) i.e. transposed vs PyTorch, as bf16 (MXU dtype)
        return jax.random.uniform(k, shape, jnp.float32, -rng, rng).astype(jnp.bfloat16)

    params = {
        "emb_w": u(next(ks), (d_in, d_model), initrange),
        "emb_b": jnp.zeros((1, d_model), jnp.float32),
        "cls_token": jax.random.uniform(next(ks), (1, d_model), jnp.float32, 0.0, 1.0),
        "cls_w": u(next(ks), (d_model, n_classes), initrange),
        "cls_b": jnp.zeros((1, n_classes), jnp.float32),
        "pe": make_positional_encoding(d_model),
        "layers": [],
    }
    bound = 1.0 / math.sqrt(d_model)
    for _ in range(nlayers):
        layer = {
            "in_proj_w": u(next(ks), (d_model, 3 * d_model), bound),
            "in_proj_b": jnp.zeros((1, 3 * d_model), jnp.float32),
            "out_proj_w": u(next(ks), (d_model, d_model), bound),
            "out_proj_b": jnp.zeros((1, d_model), jnp.float32),
            "lin1_w": u(next(ks), (d_model, d_hid), bound),
            "lin1_b": jnp.zeros((1, d_hid), jnp.float32),
            "lin2_w": u(next(ks), (d_hid, d_model), 1.0 / math.sqrt(d_hid)),
            "lin2_b": jnp.zeros((1, d_model), jnp.float32),
            "norm1_g": jnp.ones((1, d_model), jnp.float32),
            "norm1_b": jnp.zeros((1, d_model), jnp.float32),
            "norm2_g": jnp.ones((1, d_model), jnp.float32),
            "norm2_b": jnp.zeros((1, d_model), jnp.float32),
        }
        params["layers"].append(layer)
    return params


# ----------------------------------------------------------------------------
# Forward pass
# ----------------------------------------------------------------------------

def transformer_cls_forward(params, src, *, nhead):
    """src: (seq_len, batch, d_in) -> logits (batch, n_classes)."""
    S, B, d_in = src.shape
    D = params["emb_w"].shape[1]                 # static (weight shape), no tracer

    # embedding * sqrt(d_model); switch to batch-first layout for the encoder.
    xf = src.transpose(1, 0, 2).reshape(B * S, d_in)
    xf = pallas_linear(xf, params["emb_w"], params["emb_b"], scale=math.sqrt(D))
    x = xf.reshape(B, S, D)

    # prepend CLS token (not scaled, matching the reference .cls())
    cls = jnp.broadcast_to(params["cls_token"][None, :, :], (B, 1, D))
    x = jnp.concatenate([cls, x], axis=1)                        # (B, T, D)
    T = S + 1

    # positional encoding after CLS prepend (pe[0] lands on CLS, like the
    # reference ordering).  Dropout == identity (eval mode).
    x = x + params["pe"][:T, 0, :][None, :, :]

    # post-LN TransformerEncoder layers (PyTorch defaults: relu, norm_first=False)
    for layer in params["layers"]:
        x = pallas_attention_block(
            x, layer["in_proj_w"], layer["in_proj_b"],
            layer["out_proj_w"], layer["out_proj_b"],
            layer["norm1_g"], layer["norm1_b"], nhead=nhead)
        x = pallas_ffn_block(
            x, layer["lin1_w"], layer["lin1_b"],
            layer["lin2_w"], layer["lin2_b"],
            layer["norm2_g"], layer["norm2_b"])

    cls_out = x[:, 0, :]                                         # (B, D)
    logits = pallas_linear(cls_out, params["cls_w"], params["cls_b"])
    return logits


# ----------------------------------------------------------------------------

if __name__ == "__main__":
    # Small, forward-consistent shapes.
    d_in, d_model, nhead, d_hid, nlayers = 4, 32, 4, 64, 2
    seq_len, batch, n_classes = 8, 2, 10

    key = jax.random.PRNGKey(0)
    kp, kx = jax.random.split(key)
    params = init_params(kp, d_in, d_model, nhead, d_hid, nlayers, n_classes)
    src = jax.random.normal(kx, (seq_len, batch, d_in), dtype=jnp.float32)

    fwd = jax.jit(functools.partial(transformer_cls_forward, nhead=nhead))
    logits = fwd(params, src)
    jax.block_until_ready(logits)
    assert logits.shape == (batch, n_classes)
    print("KERNEL_OK")
</pallas_src>

<mosaic_0001>
module attributes {stable_mosaic.version = 11 : i64} {
  func.func @_linear_kernel(%arg0: i32, %arg1: i32, %arg2: i32, %arg3: memref<16x4xf32, #tpu.memory_space<vmem>>, %arg4: memref<4x32xbf16, #tpu.memory_space<vmem>>, %arg5: memref<1x32xf32, #tpu.memory_space<vmem>>, %arg6: memref<16x32xf32, #tpu.memory_space<vmem>>, %arg7: memref<16x32xf32, #tpu.memory_space<vmem>>) attributes {dimension_semantics = [#tpu.dimension_semantics<parallel>, #tpu.dimension_semantics<parallel>, #tpu.dimension_semantics<arbitrary>], iteration_bounds = array<i64: 1, 1, 1>, scalar_prefetch = 0 : i64, scratch_operands = 1 : i64, tpu.core_type = #tpu.core_type<tc>, window_params = [{transform_indices = @transform_0, window_bounds = array<i64: 16, 4>}, {transform_indices = @transform_1, window_bounds = array<i64: 4, 32>}, {transform_indices = @transform_2, window_bounds = array<i64: 1, 32>}, {transform_indices = @transform_3, window_bounds = array<i64: 16, 32>}]} {
    %c0_i32 = arith.constant 0 : i32
    %0 = arith.cmpi eq, %arg2, %c0_i32 : i32
    %1 = arith.extui %0 : i1 to i32
    %c0_i32_0 = arith.constant 0 : i32
    %2 = arith.cmpi ne, %1, %c0_i32_0 : i32
    scf.if %2 {
      %cst_10 = arith.constant 0.000000e+00 : f32
      %13 = vector.broadcast %cst_10 : f32 to vector<16x32xf32>
      %c0_11 = arith.constant 0 : index
      %c0_12 = arith.constant 0 : index
      %14 = vector.load %arg7[%c0_11, %c0_12] : memref<16x32xf32, #tpu.memory_space<vmem>>, vector<16x32xf32>
      tpu.vector_store %arg7[%c0_11, %c0_12], %13 {strides = array<i32>} : memref<16x32xf32, #tpu.memory_space<vmem>>, vector<16x32xf32>,
    } else {
    }
    %c0 = arith.constant 0 : index
    %c0_1 = arith.constant 0 : index
    %3 = vector.load %arg7[%c0, %c0_1] : memref<16x32xf32, #tpu.memory_space<vmem>>, vector<16x32xf32>
    %c0_2 = arith.constant 0 : index
    %c0_3 = arith.constant 0 : index
    %4 = vector.load %arg3[%c0_2, %c0_3] : memref<16x4xf32, #tpu.memory_space<vmem>>, vector<16x4xf32>
    %5 = arith.truncf %4 : vector<16x4xf32> to vector<16x4xbf16>
    %c0_4 = arith.constant 0 : index
    %c0_5 = arith.constant 0 : index
    %6 = vector.load %arg4[%c0_4, %c0_5] : memref<4x32xbf16, #tpu.memory_space<vmem>>, vector<4x32xbf16>
    %cst = arith.constant dense<0.000000e+00> : vector<16x32xf32>
    %7 = tpu.matmul %5, %6, %cst {dimension_numbers = #tpu.dot_dimension_numbers<[1], [0], [0], [1], [0, 0, 1, 1], [], []>} : vector<16x4xbf16>, vector<4x32xbf16>, vector<16x32xf32> -> vector<16x32xf32>
    %8 = arith.addf %3, %7 : vector<16x32xf32>
    %c0_6 = arith.constant 0 : index
    %c0_7 = arith.constant 0 : index
    %9 = vector.load %arg7[%c0_6, %c0_7] : memref<16x32xf32, #tpu.memory_space<vmem>>, vector<16x32xf32>
    tpu.vector_store %arg7[%c0_6, %c0_7], %8 {strides = array<i32>} : memref<16x32xf32, #tpu.memory_space<vmem>>, vector<16x32xf32>,
    %c0_i32_8 = arith.constant 0 : i32
    %10 = arith.cmpi eq, %arg2, %c0_i32_8 : i32
    %11 = arith.extui %10 : i1 to i32
    %c0_i32_9 = arith.constant 0 : i32
    %12 = arith.cmpi ne, %11, %c0_i32_9 : i32
    scf.if %12 {
      %c0_10 = arith.constant 0 : index
      %c0_11 = arith.constant 0 : index
      %13 = vector.load %arg7[%c0_10, %c0_11] : memref<16x32xf32, #tpu.memory_space<vmem>>, vector<16x32xf32>
      %c0_12 = arith.constant 0 : index
      %c0_13 = arith.constant 0 : index
      %14 = vector.load %arg5[%c0_12, %c0_13] : memref<1x32xf32, #tpu.memory_space<vmem>>, vector<1x32xf32>
      %15 = vector.broadcast %14 : vector<1x32xf32> to vector<16x32xf32>
      %16 = arith.addf %13, %15 : vector<16x32xf32>
      %cst_14 = arith.constant 5.65685415 : f32
      %17 = vector.broadcast %cst_14 : f32 to vector<16x32xf32>
      %18 = arith.mulf %16, %17 : vector<16x32xf32>
      %c0_15 = arith.constant 0 : index
      %c0_16 = arith.constant 0 : index
      %19 = vector.load %arg6[%c0_15, %c0_16] : memref<16x32xf32, #tpu.memory_space<vmem>>, vector<16x32xf32>
      tpu.vector_store %arg6[%c0_15, %c0_16], %18 {strides = array<i32>} : memref<16x32xf32, #tpu.memory_space<vmem>>, vector<16x32xf32>,
    } else {
    }
    return
  }
  func.func @transform_0(%arg0: i32, %arg1: i32, %arg2: i32) -> (i32, i32) {
    %c0_i32 = arith.constant 0 : i32
    return %arg0, %arg2 : i32, i32
  }
  func.func @transform_1(%arg0: i32, %arg1: i32, %arg2: i32) -> (i32, i32) {
    %c0_i32 = arith.constant 0 : i32
    return %arg2, %arg1 : i32, i32
  }
  func.func @transform_2(%arg0: i32, %arg1: i32, %arg2: i32) -> (i32, i32) {
    %c0_i32 = arith.constant 0 : i32
    %c0_i32_0 = arith.constant 0 : i32
    return %c0_i32, %arg1 : i32, i32
  }
  func.func @transform_3(%arg0: i32, %arg1: i32, %arg2: i32) -> (i32, i32) {
    %c0_i32 = arith.constant 0 : i32
    return %arg0, %arg1 : i32, i32
  }
}

module attributes {stable_mosaic.version = 11 : i64} {
  func.func @_attn_block_kernel(%arg0: i32, %arg1: memref<1x9x32xf32, #tpu.memory_space<vmem>>, %arg2: memref<32x96xbf16, #tpu.memory_space<vmem>>, %arg3: memref<1x96xf32, #tpu.memory_space<vmem>>, %arg4: memref<32x32xbf16, #tpu.memory_space<vmem>>, %arg5: memref<1x32xf32, #tpu.memory_space<vmem>>, %arg6: memref<1x32xf32, #tpu.memory_space<vmem>>, %arg7: memref<1x32xf32, #tpu.memory_space<vmem>>, %arg8: memref<1x9x32xf32, #tpu.memory_space<vmem>>) attributes {dimension_semantics = [#tpu.dimension_semantics<parallel>], iteration_bounds = array<i64: 2>, scalar_prefetch = 0 : i64, scratch_operands = 0 : i64, tpu.core_type = #tpu.core_type<tc>, window_params = [{transform_indices = @transform_0, window_bounds = array<i64: 1, 9, 32>}, {pipeline_mode = #tpu.pipeline_mode<synchronous>, transform_indices = @transform_1, window_bounds = array<i64: 32, 96>}, {pipeline_mode = #tpu.pipeline_mode<synchronous>, transform_indices = @transform_2, window_bounds = array<i64: 1, 96>}, {pipeline_mode = #tpu.pipeline_mode<synchronous>, transform_indices = @transform_3, window_bounds = array<i64: 32, 32>}, {pipeline_mode = #tpu.pipeline_mode<synchronous>, transform_indices = @transform_4, window_bounds = array<i64: 1, 32>}, {pipeline_mode = #tpu.pipeline_mode<synchronous>, transform_indices = @transform_5, window_bounds = array<i64: 1, 32>}, {pipeline_mode = #tpu.pipeline_mode<synchronous>, transform_indices = @transform_6, window_bounds = array<i64: 1, 32>}, {transform_indices = @transform_7, window_bounds = array<i64: 1, 9, 32>}]} {
    %c0 = arith.constant 0 : index
    %c0_0 = arith.constant 0 : index
    %c0_1 = arith.constant 0 : index
    %0 = vector.load %arg1[%c0, %c0_0, %c0_1] : memref<1x9x32xf32, #tpu.memory_space<vmem>>, vector<1x9x32xf32>
    %1 = vector.shape_cast %0 : vector<1x9x32xf32> to vector<9x32xf32>
    %2 = arith.truncf %1 : vector<9x32xf32> to vector<9x32xbf16>
    %c0_2 = arith.constant 0 : index
    %c0_3 = arith.constant 0 : index
    %3 = vector.load %arg2[%c0_2, %c0_3] : memref<32x96xbf16, #tpu.memory_space<vmem>>, vector<32x96xbf16>
    %cst = arith.constant dense<0.000000e+00> : vector<9x96xf32>
    %4 = tpu.matmul %2, %3, %cst {dimension_numbers = #tpu.dot_dimension_numbers<[1], [0], [0], [1], [0, 0, 1, 1], [], []>} : vector<9x32xbf16>, vector<32x96xbf16>, vector<9x96xf32> -> vector<9x96xf32>
    %c0_4 = arith.constant 0 : index
    %c0_5 = arith.constant 0 : index
    %5 = vector.load %arg3[%c0_4, %c0_5] : memref<1x96xf32, #tpu.memory_space<vmem>>, vector<1x96xf32>
    %6 = vector.broadcast %5 : vector<1x96xf32> to vector<9x96xf32>
    %7 = arith.addf %4, %6 : vector<9x96xf32>
    %8 = vector.extract_strided_slice %7 {offsets = [0, 0], sizes = [9, 32], strides = [1, 1]} : vector<9x96xf32> to vector<9x32xf32>
    %cst_6 = arith.constant 0.353553385 : f32
    %9 = vector.broadcast %cst_6 : f32 to vector<9x32xf32>
    %10 = arith.mulf %8, %9 : vector<9x32xf32>
    %11 = vector.extract_strided_slice %7 {offsets = [0, 32], sizes = [9, 32], strides = [1, 1]} : vector<9x96xf32> to vector<9x32xf32>
    %12 = vector.extract_strided_slice %7 {offsets = [0, 64], sizes = [9, 32], strides = [1, 1]} : vector<9x96xf32> to vector<9x32xf32>
    %13 = vector.extract_strided_slice %10 {offsets = [0, 0], sizes = [9, 8], strides = [1, 1]} : vector<9x32xf32> to vector<9x8xf32>
    %14 = arith.truncf %13 : vector<9x8xf32> to vector<9x8xbf16>
    %15 = vector.extract_strided_slice %11 {offsets = [0, 0], sizes = [9, 8], strides = [1, 1]} : vector<9x32xf32> to vector<9x8xf32>
    %16 = arith.truncf %15 : vector<9x8xf32> to vector<9x8xbf16>
    %17 = vector.extract_strided_slice %12 {offsets = [0, 0], sizes = [9, 8], strides = [1, 1]} : vector<9x32xf32> to vector<9x8xf32>
    %18 = arith.truncf %17 : vector<9x8xf32> to vector<9x8xbf16>
    %cst_7 = arith.constant dense<0.000000e+00> : vector<9x9xf32>
    %19 = tpu.matmul %14, %16, %cst_7 {dimension_numbers = #tpu.dot_dimension_numbers<[1], [1], [0], [0], [0, 0, 1, 0], [], []>} : vector<9x8xbf16>, vector<9x8xbf16>, vector<9x9xf32> -> vector<9x9xf32>
    %cst_8 = arith.constant dense<0xFF800000> : vector<9xf32>
    %20 = vector.multi_reduction <maximumf>, %19, %cst_8 [1] : vector<9x9xf32> to vector<9xf32>
    %21 = vector.shape_cast %20 : vector<9xf32> to vector<9x1xf32>
    %22 = vector.broadcast %21 : vector<9x1xf32> to vector<9x9xf32>
    %23 = arith.subf %19, %22 : vector<9x9xf32>
    %24 = math.exp %23 : vector<9x9xf32>
    %cst_9 = arith.constant dense<0.000000e+00> : vector<9xf32>
    %25 = vector.multi_reduction <add>, %24, %cst_9 [1] : vector<9x9xf32> to vector<9xf32>
    %26 = vector.shape_cast %25 : vector<9xf32> to vector<9x1xf32>
    %27 = arith.truncf %24 : vector<9x9xf32> to vector<9x9xbf16>
    %cst_10 = arith.constant dense<0.000000e+00> : vector<9x8xf32>
    %28 = tpu.matmul %27, %18, %cst_10 {dimension_numbers = #tpu.dot_dimension_numbers<[1], [0], [0], [1], [0, 0, 1, 1], [], []>} : vector<9x9xbf16>, vector<9x8xbf16>, vector<9x8xf32> -> vector<9x8xf32>
    %29 = tpu.reciprocal %26 {approx = true} : vector<9x1xf32> -> vector<9x1xf32>
    %30 = vector.broadcast %29 : vector<9x1xf32> to vector<9x8xf32>
    %31 = arith.mulf %28, %30 : vector<9x8xf32>
    %32 = arith.truncf %31 : vector<9x8xf32> to vector<9x8xbf16>
    %c0_11 = arith.constant 0 : index
    %c0_12 = arith.constant 0 : index
    %33 = vector.load %arg4[%c0_11, %c0_12] : memref<32x32xbf16, #tpu.memory_space<vmem>>, vector<8x32xbf16>
    %cst_13 = arith.constant dense<0.000000e+00> : vector<9x32xf32>
    %34 = tpu.matmul %32, %33, %cst_13 {dimension_numbers = #tpu.dot_dimension_numbers<[1], [0], [0], [1], [0, 0, 1, 1], [], []>} : vector<9x8xbf16>, vector<8x32xbf16>, vector<9x32xf32> -> vector<9x32xf32>
    %35 = vector.extract_strided_slice %10 {offsets = [0, 8], sizes = [9, 8], strides = [1, 1]} : vector<9x32xf32> to vector<9x8xf32>
    %36 = arith.truncf %35 : vector<9x8xf32> to vector<9x8xbf16>
    %37 = vector.extract_strided_slice %11 {offsets = [0, 8], sizes = [9, 8], strides = [1, 1]} : vector<9x32xf32> to vector<9x8xf32>
    %38 = arith.truncf %37 : vector<9x8xf32> to vector<9x8xbf16>
    %39 = vector.extract_strided_slice %12 {offsets = [0, 8], sizes = [9, 8], strides = [1, 1]} : vector<9x32xf32> to vector<9x8xf32>
    %40 = arith.truncf %39 : vector<9x8xf32> to vector<9x8xbf16>
    %cst_14 = arith.constant dense<0.000000e+00> : vector<9x9xf32>
    %41 = tpu.matmul %36, %38, %cst_14 {dimension_numbers = #tpu.dot_dimension_numbers<[1], [1], [0], [0], [0, 0, 1, 0], [], []>} : vector<9x8xbf16>, vector<9x8xbf16>, vector<9x9xf32> -> vector<9x9xf32>
    %cst_15 = arith.constant dense<0xFF800000> : vector<9xf32>
    %42 = vector.multi_reduction <maximumf>, %41, %cst_15 [1] : vector<9x9xf32> to vector<9xf32>
    %43 = vector.shape_cast %42 : vector<9xf32> to vector<9x1xf32>
    %44 = vector.broadcast %43 : vector<9x1xf32> to vector<9x9xf32>
    %45 = arith.subf %41, %44 : vector<9x9xf32>
    %46 = math.exp %45 : vector<9x9xf32>
    %cst_16 = arith.constant dense<0.000000e+00> : vector<9xf32>
    %47 = vector.multi_reduction <add>, %46, %cst_16 [1] : vector<9x9xf32> to vector<9xf32>
    %48 = vector.shape_cast %47 : vector<9xf32> to vector<9x1xf32>
    %49 = arith.truncf %46 : vector<9x9xf32> to vector<9x9xbf16>
    %cst_17 = arith.constant dense<0.000000e+00> : vector<9x8xf32>
    %50 = tpu.matmul %49, %40, %cst_17 {dimension_numbers = #tpu.dot_dimension_numbers<[1], [0], [0], [1], [0, 0, 1, 1], [], []>} : vector<9x9xbf16>, vector<9x8xbf16>, vector<9x8xf32> -> vector<9x8xf32>
    %51 = tpu.reciprocal %48 {approx = true} : vector<9x1xf32> -> vector<9x1xf32>
    %52 = vector.broadcast %51 : vector<9x1xf32> to vector<9x8xf32>
    %53 = arith.mulf %50, %52 : vector<9x8xf32>
    %54 = arith.truncf %53 : vector<9x8xf32> to vector<9x8xbf16>
    %c8 = arith.constant 8 : index
    %c0_18 = arith.constant 0 : index
    %55 = vector.load %arg4[%c8, %c0_18] : memref<32x32xbf16, #tpu.memory_space<vmem>>, vector<8x32xbf16>
    %cst_19 = arith.constant dense<0.000000e+00> : vector<9x32xf32>
    %56 = tpu.matmul %54, %55, %cst_19 {dimension_numbers = #tpu.dot_dimension_numbers<[1], [0], [0], [1], [0, 0, 1, 1], [], []>} : vector<9x8xbf16>, vector<8x32xbf16>, vector<9x32xf32> -> vector<9x32xf32>
    %57 = arith.addf %34, %56 : vector<9x32xf32>
    %58 = vector.extract_strided_slice %10 {offsets = [0, 16], sizes = [9, 8], strides = [1, 1]} : vector<9x32xf32> to vector<9x8xf32>
    %59 = arith.truncf %58 : vector<9x8xf32> to vector<9x8xbf16>
    %60 = vector.extract_strided_slice %11 {offsets = [0, 16], sizes = [9, 8], strides = [1, 1]} : vector<9x32xf32> to vector<9x8xf32>
    %61 = arith.truncf %60 : vector<9x8xf32> to vector<9x8xbf16>
    %62 = vector.extract_strided_slice %12 {offsets = [0, 16], sizes = [9, 8], strides = [1, 1]} : vector<9x32xf32> to vector<9x8xf32>
    %63 = arith.truncf %62 : vector<9x8xf32> to vector<9x8xbf16>
    %cst_20 = arith.constant dense<0.000000e+00> : vector<9x9xf32>
    %64 = tpu.matmul %59, %61, %cst_20 {dimension_numbers = #tpu.dot_dimension_numbers<[1], [1], [0], [0], [0, 0, 1, 0], [], []>} : vector<9x8xbf16>, vector<9x8xbf16>, vector<9x9xf32> -> vector<9x9xf32>
    %cst_21 = arith.constant dense<0xFF800000> : vector<9xf32>
    %65 = vector.multi_reduction <maximumf>, %64, %cst_21 [1] : vector<9x9xf32> to vector<9xf32>
    %66 = vector.shape_cast %65 : vector<9xf32> to vector<9x1xf32>
    %67 = vector.broadcast %66 : vector<9x1xf32> to vector<9x9xf32>
    %68 = arith.subf %64, %67 : vector<9x9xf32>
    %69 = math.exp %68 : vector<9x9xf32>
    %cst_22 = arith.constant dense<0.000000e+00> : vector<9xf32>
    %70 = vector.multi_reduction <add>, %69, %cst_22 [1] : vector<9x9xf32> to vector<9xf32>
    %71 = vector.shape_cast %70 : vector<9xf32> to vector<9x1xf32>
    %72 = arith.truncf %69 : vector<9x9xf32> to vector<9x9xbf16>
    %cst_23 = arith.constant dense<0.000000e+00> : vector<9x8xf32>
    %73 = tpu.matmul %72, %63, %cst_23 {dimension_numbers = #tpu.dot_dimension_numbers<[1], [0], [0], [1], [0, 0, 1, 1], [], []>} : vector<9x9xbf16>, vector<9x8xbf16>, vector<9x8xf32> -> vector<9x8xf32>
    %74 = tpu.reciprocal %71 {approx = true} : vector<9x1xf32> -> vector<9x1xf32>
    %75 = vector.broadcast %74 : vector<9x1xf32> to vector<9x8xf32>
    %76 = arith.mulf %73, %75 : vector<9x8xf32>
    %77 = arith.truncf %76 : vector<9x8xf32> to vector<9x8xbf16>
    %c16 = arith.constant 16 : index
    %c0_24 = arith.constant 0 : index
    %78 = vector.load %arg4[%c16, %c0_24] : memref<32x32xbf16, #tpu.memory_space<vmem>>, vector<8x32xbf16>
    %cst_25 = arith.constant dense<0.000000e+00> : vector<9x32xf32>
    %79 = tpu.matmul %77, %78, %cst_25 {dimension_numbers = #tpu.dot_dimension_numbers<[1], [0], [0], [1], [0, 0, 1, 1], [], []>} : vector<9x8xbf16>, vector<8x32xbf16>, vector<9x32xf32> -> vector<9x32xf32>
    %80 = arith.addf %57, %79 : vector<9x32xf32>
    %81 = vector.extract_strided_slice %10 {offsets = [0, 24], sizes = [9, 8], strides = [1, 1]} : vector<9x32xf32> to vector<9x8xf32>
    %82 = arith.truncf %81 : vector<9x8xf32> to vector<9x8xbf16>
    %83 = vector.extract_strided_slice %11 {offsets = [0, 24], sizes = [9, 8], strides = [1, 1]} : vector<9x32xf32> to vector<9x8xf32>
    %84 = arith.truncf %83 : vector<9x8xf32> to vector<9x8xbf16>
    %85 = vector.extract_strided_slice %12 {offsets = [0, 24], sizes = [9, 8], strides = [1, 1]} : vector<9x32xf32> to vector<9x8xf32>
    %86 = arith.truncf %85 : vector<9x8xf32> to vector<9x8xbf16>
    %cst_26 = arith.constant dense<0.000000e+00> : vector<9x9xf32>
    %87 = tpu.matmul %82, %84, %cst_26 {dimension_numbers = #tpu.dot_dimension_numbers<[1], [1], [0], [0], [0, 0, 1, 0], [], []>} : vector<9x8xbf16>, vector<9x8xbf16>, vector<9x9xf32> -> vector<9x9xf32>
    %cst_27 = arith.constant dense<0xFF800000> : vector<9xf32>
    %88 = vector.multi_reduction <maximumf>, %87, %cst_27 [1] : vector<9x9xf32> to vector<9xf32>
    %89 = vector.shape_cast %88 : vector<9xf32> to vector<9x1xf32>
    %90 = vector.broadcast %89 : vector<9x1xf32> to vector<9x9xf32>
    %91 = arith.subf %87, %90 : vector<9x9xf32>
    %92 = math.exp %91 : vector<9x9xf32>
    %cst_28 = arith.constant dense<0.000000e+00> : vector<9xf32>
    %93 = vector.multi_reduction <add>, %92, %cst_28 [1] : vector<9x9xf32> to vector<9xf32>
    %94 = vector.shape_cast %93 : vector<9xf32> to vector<9x1xf32>
    %95 = arith.truncf %92 : vector<9x9xf32> to vector<9x9xbf16>
    %cst_29 = arith.constant dense<0.000000e+00> : vector<9x8xf32>
    %96 = tpu.matmul %95, %86, %cst_29 {dimension_numbers = #tpu.dot_dimension_numbers<[1], [0], [0], [1], [0, 0, 1, 1], [], []>} : vector<9x9xbf16>, vector<9x8xbf16>, vector<9x8xf32> -> vector<9x8xf32>
    %97 = tpu.reciprocal %94 {approx = true} : vector<9x1xf32> -> vector<9x1xf32>
    %98 = vector.broadcast %97 : vector<9x1xf32> to vector<9x8xf32>
    %99 = arith.mulf %96, %98 : vector<9x8xf32>
    %100 = arith.truncf %99 : vector<9x8xf32> to vector<9x8xbf16>
    %c24 = arith.constant 24 : index
    %c0_30 = arith.constant 0 : index
    %101 = vector.load %arg4[%c24, %c0_30] : memref<32x32xbf16, #tpu.memory_space<vmem>>, vector<8x32xbf16>
    %cst_31 = arith.constant dense<0.000000e+00> : vector<9x32xf32>
    %102 = tpu.matmul %100, %101, %cst_31 {dimension_numbers = #tpu.dot_dimension_numbers<[1], [0], [0], [1], [0, 0, 1, 1], [], []>} : vector<9x8xbf16>, vector<8x32xbf16>, vector<9x32xf32> -> vector<9x32xf32>
    %103 = arith.addf %80, %102 : vector<9x32xf32>
    %c0_32 = arith.constant 0 : index
    %c0_33 = arith.constant 0 : index
    %104 = vector.load %arg5[%c0_32, %c0_33] : memref<1x32xf32, #tpu.memory_space<vmem>>, vector<1x32xf32>
    %105 = vector.broadcast %104 : vector<1x32xf32> to vector<9x32xf32>
    %106 = arith.addf %103, %105 : vector<9x32xf32>
    %107 = arith.addf %1, %106 : vector<9x32xf32>
    %c0_34 = arith.constant 0 : index
    %c0_35 = arith.constant 0 : index
    %108 = vector.load %arg6[%c0_34, %c0_35] : memref<1x32xf32, #tpu.memory_space<vmem>>, vector<1x32xf32>
    %c0_36 = arith.constant 0 : index
    %c0_37 = arith.constant 0 : index
    %109 = vector.load %arg7[%c0_36, %c0_37] : memref<1x32xf32, #tpu.memory_space<vmem>>, vector<1x32xf32>
    %cst_38 = arith.constant dense<0.000000e+00> : vector<9xf32>
    %110 = vector.multi_reduction <add>, %107, %cst_38 [1] : vector<9x32xf32> to vector<9xf32>
    %111 = vector.shape_cast %110 : vector<9xf32> to vector<9x1xf32>
    %cst_39 = arith.constant 3.200000e+01 : f32
    %112 = vector.broadcast %cst_39 : f32 to vector<9x1xf32>
    %113 = arith.divf %111, %112 : vector<9x1xf32>
    %114 = vector.broadcast %113 : vector<9x1xf32> to vector<9x32xf32>
    %115 = arith.subf %107, %114 : vector<9x32xf32>
    %116 = arith.mulf %115, %115 : vector<9x32xf32>
    %cst_40 = arith.constant dense<0.000000e+00> : vector<9xf32>
    %117 = vector.multi_reduction <add>, %116, %cst_40 [1] : vector<9x32xf32> to vector<9xf32>
    %118 = vector.shape_cast %117 : vector<9xf32> to vector<9x1xf32>
    %cst_41 = arith.constant 3.200000e+01 : f32
    %119 = vector.broadcast %cst_41 : f32 to vector<9x1xf32>
    %120 = arith.divf %118, %119 : vector<9x1xf32>
    %cst_42 = arith.constant 9.99999974E-6 : f32
    %121 = vector.broadcast %cst_42 : f32 to vector<9x1xf32>
    %122 = arith.addf %120, %121 : vector<9x1xf32>
    %123 = math.rsqrt %122 : vector<9x1xf32>
    %124 = vector.broadcast %123 : vector<9x1xf32> to vector<9x32xf32>
    %125 = arith.mulf %115, %124 : vector<9x32xf32>
    %126 = vector.broadcast %108 : vector<1x32xf32> to vector<9x32xf32>
    %127 = arith.mulf %125, %126 : vector<9x32xf32>
    %128 = vector.broadcast %109 : vector<1x32xf32> to vector<9x32xf32>
    %129 = arith.addf %127, %128 : vector<9x32xf32>
    %c0_43 = arith.constant 0 : index
    %c0_44 = arith.constant 0 : index
    %c0_45 = arith.constant 0 : index
    %130 = vector.load %arg8[%c0_43, %c0_44, %c0_45] : memref<1x9x32xf32, #tpu.memory_space<vmem>>, vector<1x9x32xf32>
    %131 = vector.shape_cast %130 : vector<1x9x32xf32> to vector<9x32xf32>
    %132 = vector.shape_cast %129 : vector<9x32xf32> to vector<1x9x32xf32>
    tpu.vector_store %arg8[%c0_43, %c0_44, %c0_45], %132 {strides = array<i32>} : memref<1x9x32xf32, #tpu.memory_space<vmem>>, vector<1x9x32xf32>,
    return
  }
  func.func @transform_0(%arg0: i32) -> (i32, i32, i32) {
    %c0_i32 = arith.constant 0 : i32
    %c0_i32_0 = arith.constant 0 : i32
    %c0_i32_1 = arith.constant 0 : i32
    return %arg0, %c0_i32, %c0_i32_0 : i32, i32, i32
  }
  func.func @transform_1(%arg0: i32) -> (i32, i32) {
    %c0_i32 = arith.constant 0 : i32
    %c0_i32_0 = arith.constant 0 : i32
    %c0_i32_1 = arith.constant 0 : i32
    return %c0_i32, %c0_i32_0 : i32, i32
  }
  func.func @transform_2(%arg0: i32) -> (i32, i32) {
    %c0_i32 = arith.constant 0 : i32
    %c0_i32_0 = arith.constant 0 : i32
    %c0_i32_1 = arith.constant 0 : i32
    return %c0_i32, %c0_i32_0 : i32, i32
  }
  func.func @transform_3(%arg0: i32) -> (i32, i32) {
    %c0_i32 = arith.constant 0 : i32
    %c0_i32_0 = arith.constant 0 : i32
    %c0_i32_1 = arith.constant 0 : i32
    return %c0_i32, %c0_i32_0 : i32, i32
  }
  func.func @transform_4(%arg0: i32) -> (i32, i32) {
    %c0_i32 = arith.constant 0 : i32
    %c0_i32_0 = arith.constant 0 : i32
    %c0_i32_1 = arith.constant 0 : i32
    return %c0_i32, %c0_i32_0 : i32, i32
  }
  func.func @transform_5(%arg0: i32) -> (i32, i32) {
    %c0_i32 = arith.constant 0 : i32
    %c0_i32_0 = arith.constant 0 : i32
    %c0_i32_1 = arith.constant 0 : i32
    return %c0_i32, %c0_i32_0 : i32, i32
  }
  func.func @transform_6(%arg0: i32) -> (i32, i32) {
    %c0_i32 = arith.constant 0 : i32
    %c0_i32_0 = arith.constant 0 : i32
    %c0_i32_1 = arith.constant 0 : i32
    return %c0_i32, %c0_i32_0 : i32, i32
  }
  func.func @transform_7(%arg0: i32) -> (i32, i32, i32) {
    %c0_i32 = arith.constant 0 : i32
    %c0_i32_0 = arith.constant 0 : i32
    %c0_i32_1 = arith.constant 0 : i32
    return %arg0, %c0_i32, %c0_i32_0 : i32, i32, i32
  }
}

module attributes {stable_mosaic.version = 11 : i64} {
  func.func @_ffn_block_kernel(%arg0: i32, %arg1: memref<1x9x32xf32, #tpu.memory_space<vmem>>, %arg2: memref<32x64xbf16, #tpu.memory_space<vmem>>, %arg3: memref<1x64xf32, #tpu.memory_space<vmem>>, %arg4: memref<64x32xbf16, #tpu.memory_space<vmem>>, %arg5: memref<1x32xf32, #tpu.memory_space<vmem>>, %arg6: memref<1x32xf32, #tpu.memory_space<vmem>>, %arg7: memref<1x32xf32, #tpu.memory_space<vmem>>, %arg8: memref<1x9x32xf32, #tpu.memory_space<vmem>>) attributes {dimension_semantics = [#tpu.dimension_semantics<parallel>], iteration_bounds = array<i64: 2>, scalar_prefetch = 0 : i64, scratch_operands = 0 : i64, tpu.core_type = #tpu.core_type<tc>, window_params = [{transform_indices = @transform_0, window_bounds = array<i64: 1, 9, 32>}, {pipeline_mode = #tpu.pipeline_mode<synchronous>, transform_indices = @transform_1, window_bounds = array<i64: 32, 64>}, {pipeline_mode = #tpu.pipeline_mode<synchronous>, transform_indices = @transform_2, window_bounds = array<i64: 1, 64>}, {pipeline_mode = #tpu.pipeline_mode<synchronous>, transform_indices = @transform_3, window_bounds = array<i64: 64, 32>}, {pipeline_mode = #tpu.pipeline_mode<synchronous>, transform_indices = @transform_4, window_bounds = array<i64: 1, 32>}, {pipeline_mode = #tpu.pipeline_mode<synchronous>, transform_indices = @transform_5, window_bounds = array<i64: 1, 32>}, {pipeline_mode = #tpu.pipeline_mode<synchronous>, transform_indices = @transform_6, window_bounds = array<i64: 1, 32>}, {transform_indices = @transform_7, window_bounds = array<i64: 1, 9, 32>}]} {
    %c0 = arith.constant 0 : index
    %c0_0 = arith.constant 0 : index
    %c0_1 = arith.constant 0 : index
    %0 = vector.load %arg1[%c0, %c0_0, %c0_1] : memref<1x9x32xf32, #tpu.memory_space<vmem>>, vector<1x9x32xf32>
    %1 = vector.shape_cast %0 : vector<1x9x32xf32> to vector<9x32xf32>
    %2 = arith.truncf %1 : vector<9x32xf32> to vector<9x32xbf16>
    %c0_2 = arith.constant 0 : index
    %c0_3 = arith.constant 0 : index
    %3 = vector.load %arg2[%c0_2, %c0_3] : memref<32x64xbf16, #tpu.memory_space<vmem>>, vector<32x64xbf16>
    %cst = arith.constant dense<0.000000e+00> : vector<9x64xf32>
    %4 = tpu.matmul %2, %3, %cst {dimension_numbers = #tpu.dot_dimension_numbers<[1], [0], [0], [1], [0, 0, 1, 1], [], []>} : vector<9x32xbf16>, vector<32x64xbf16>, vector<9x64xf32> -> vector<9x64xf32>
    %c0_4 = arith.constant 0 : index
    %c0_5 = arith.constant 0 : index
    %5 = vector.load %arg3[%c0_4, %c0_5] : memref<1x64xf32, #tpu.memory_space<vmem>>, vector<1x64xf32>
    %6 = vector.broadcast %5 : vector<1x64xf32> to vector<9x64xf32>
    %7 = arith.addf %4, %6 : vector<9x64xf32>
    %cst_6 = arith.constant 0.000000e+00 : f32
    %8 = vector.broadcast %cst_6 : f32 to vector<9x64xf32>
    %9 = arith.maximumf %7, %8 : vector<9x64xf32>
    %10 = arith.truncf %9 : vector<9x64xf32> to vector<9x64xbf16>
    %c0_7 = arith.constant 0 : index
    %c0_8 = arith.constant 0 : index
    %11 = vector.load %arg4[%c0_7, %c0_8] : memref<64x32xbf16, #tpu.memory_space<vmem>>, vector<64x32xbf16>
    %cst_9 = arith.constant dense<0.000000e+00> : vector<9x32xf32>
    %12 = tpu.matmul %10, %11, %cst_9 {dimension_numbers = #tpu.dot_dimension_numbers<[1], [0], [0], [1], [0, 0, 1, 1], [], []>} : vector<9x64xbf16>, vector<64x32xbf16>, vector<9x32xf32> -> vector<9x32xf32>
    %c0_10 = arith.constant 0 : index
    %c0_11 = arith.constant 0 : index
    %13 = vector.load %arg5[%c0_10, %c0_11] : memref<1x32xf32, #tpu.memory_space<vmem>>, vector<1x32xf32>
    %14 = vector.broadcast %13 : vector<1x32xf32> to vector<9x32xf32>
    %15 = arith.addf %12, %14 : vector<9x32xf32>
    %16 = arith.addf %1, %15 : vector<9x32xf32>
    %c0_12 = arith.constant 0 : index
    %c0_13 = arith.constant 0 : index
    %17 = vector.load %arg6[%c0_12, %c0_13] : memref<1x32xf32, #tpu.memory_space<vmem>>, vector<1x32xf32>
    %c0_14 = arith.constant 0 : index
    %c0_15 = arith.constant 0 : index
    %18 = vector.load %arg7[%c0_14, %c0_15] : memref<1x32xf32, #tpu.memory_space<vmem>>, vector<1x32xf32>
    %cst_16 = arith.constant dense<0.000000e+00> : vector<9xf32>
    %19 = vector.multi_reduction <add>, %16, %cst_16 [1] : vector<9x32xf32> to vector<9xf32>
    %20 = vector.shape_cast %19 : vector<9xf32> to vector<9x1xf32>
    %cst_17 = arith.constant 3.200000e+01 : f32
    %21 = vector.broadcast %cst_17 : f32 to vector<9x1xf32>
    %22 = arith.divf %20, %21 : vector<9x1xf32>
    %23 = vector.broadcast %22 : vector<9x1xf32> to vector<9x32xf32>
    %24 = arith.subf %16, %23 : vector<9x32xf32>
    %25 = arith.mulf %24, %24 : vector<9x32xf32>
    %cst_18 = arith.constant dense<0.000000e+00> : vector<9xf32>
    %26 = vector.multi_reduction <add>, %25, %cst_18 [1] : vector<9x32xf32> to vector<9xf32>
    %27 = vector.shape_cast %26 : vector<9xf32> to vector<9x1xf32>
    %cst_19 = arith.constant 3.200000e+01 : f32
    %28 = vector.broadcast %cst_19 : f32 to vector<9x1xf32>
    %29 = arith.divf %27, %28 : vector<9x1xf32>
    %cst_20 = arith.constant 9.99999974E-6 : f32
    %30 = vector.broadcast %cst_20 : f32 to vector<9x1xf32>
    %31 = arith.addf %29, %30 : vector<9x1xf32>
    %32 = math.rsqrt %31 : vector<9x1xf32>
    %33 = vector.broadcast %32 : vector<9x1xf32> to vector<9x32xf32>
    %34 = arith.mulf %24, %33 : vector<9x32xf32>
    %35 = vector.broadcast %17 : vector<1x32xf32> to vector<9x32xf32>
    %36 = arith.mulf %34, %35 : vector<9x32xf32>
    %37 = vector.broadcast %18 : vector<1x32xf32> to vector<9x32xf32>
    %38 = arith.addf %36, %37 : vector<9x32xf32>
    %c0_21 = arith.constant 0 : index
    %c0_22 = arith.constant 0 : index
    %c0_23 = arith.constant 0 : index
    %39 = vector.load %arg8[%c0_21, %c0_22, %c0_23] : memref<1x9x32xf32, #tpu.memory_space<vmem>>, vector<1x9x32xf32>
    %40 = vector.shape_cast %39 : vector<1x9x32xf32> to vector<9x32xf32>
    %41 = vector.shape_cast %38 : vector<9x32xf32> to vector<1x9x32xf32>
    tpu.vector_store %arg8[%c0_21, %c0_22, %c0_23], %41 {strides = array<i32>} : memref<1x9x32xf32, #tpu.memory_space<vmem>>, vector<1x9x32xf32>,
    return
  }
  func.func @transform_0(%arg0: i32) -> (i32, i32, i32) {
    %c0_i32 = arith.constant 0 : i32
    %c0_i32_0 = arith.constant 0 : i32
    %c0_i32_1 = arith.constant 0 : i32
    return %arg0, %c0_i32, %c0_i32_0 : i32, i32, i32
  }
  func.func @transform_1(%arg0: i32) -> (i32, i32) {
    %c0_i32 = arith.constant 0 : i32
    %c0_i32_0 = arith.constant 0 : i32
    %c0_i32_1 = arith.constant 0 : i32
    return %c0_i32, %c0_i32_0 : i32, i32
  }
  func.func @transform_2(%arg0: i32) -> (i32, i32) {
    %c0_i32 = arith.constant 0 : i32
    %c0_i32_0 = arith.constant 0 : i32
    %c0_i32_1 = arith.constant 0 : i32
    return %c0_i32, %c0_i32_0 : i32, i32
  }
  func.func @transform_3(%arg0: i32) -> (i32, i32) {
    %c0_i32 = arith.constant 0 : i32
    %c0_i32_0 = arith.constant 0 : i32
    %c0_i32_1 = arith.constant 0 : i32
    return %c0_i32, %c0_i32_0 : i32, i32
  }
  func.func @transform_4(%arg0: i32) -> (i32, i32) {
    %c0_i32 = arith.constant 0 : i32
    %c0_i32_0 = arith.constant 0 : i32
    %c0_i32_1 = arith.constant 0 : i32
    return %c0_i32, %c0_i32_0 : i32, i32
  }
  func.func @transform_5(%arg0: i32) -> (i32, i32) {
    %c0_i32 = arith.constant 0 : i32
    %c0_i32_0 = arith.constant 0 : i32
    %c0_i32_1 = arith.constant 0 : i32
    return %c0_i32, %c0_i32_0 : i32, i32
  }
  func.func @transform_6(%arg0: i32) -> (i32, i32) {
    %c0_i32 = arith.constant 0 : i32
    %c0_i32_0 = arith.constant 0 : i32
    %c0_i32_1 = arith.constant 0 : i32
    return %c0_i32, %c0_i32_0 : i32, i32
  }
  func.func @transform_7(%arg0: i32) -> (i32, i32, i32) {
    %c0_i32 = arith.constant 0 : i32
    %c0_i32_0 = arith.constant 0 : i32
    %c0_i32_1 = arith.constant 0 : i32
    return %arg0, %c0_i32, %c0_i32_0 : i32, i32, i32
  }
}

module attributes {stable_mosaic.version = 11 : i64} {
  func.func @_linear_kernel(%arg0: i32, %arg1: i32, %arg2: i32, %arg3: memref<2x32xf32, #tpu.memory_space<vmem>>, %arg4: memref<32x10xbf16, #tpu.memory_space<vmem>>, %arg5: memref<1x10xf32, #tpu.memory_space<vmem>>, %arg6: memref<2x10xf32, #tpu.memory_space<vmem>>, %arg7: memref<2x10xf32, #tpu.memory_space<vmem>>) attributes {dimension_semantics = [#tpu.dimension_semantics<parallel>, #tpu.dimension_semantics<parallel>, #tpu.dimension_semantics<arbitrary>], iteration_bounds = array<i64: 1, 1, 1>, scalar_prefetch = 0 : i64, scratch_operands = 1 : i64, tpu.core_type = #tpu.core_type<tc>, window_params = [{transform_indices = @transform_0, window_bounds = array<i64: 2, 32>}, {transform_indices = @transform_1, window_bounds = array<i64: 32, 10>}, {transform_indices = @transform_2, window_bounds = array<i64: 1, 10>}, {transform_indices = @transform_3, window_bounds = array<i64: 2, 10>}]} {
    %c0_i32 = arith.constant 0 : i32
    %0 = arith.cmpi eq, %arg2, %c0_i32 : i32
    %1 = arith.extui %0 : i1 to i32
    %c0_i32_0 = arith.constant 0 : i32
    %2 = arith.cmpi ne, %1, %c0_i32_0 : i32
    scf.if %2 {
      %cst_10 = arith.constant 0.000000e+00 : f32
      %13 = vector.broadcast %cst_10 : f32 to vector<2x10xf32>
      %c0_11 = arith.constant 0 : index
      %c0_12 = arith.constant 0 : index
      %14 = vector.load %arg7[%c0_11, %c0_12] : memref<2x10xf32, #tpu.memory_space<vmem>>, vector<2x10xf32>
      tpu.vector_store %arg7[%c0_11, %c0_12], %13 {strides = array<i32>} : memref<2x10xf32, #tpu.memory_space<vmem>>, vector<2x10xf32>,
    } else {
    }
    %c0 = arith.constant 0 : index
    %c0_1 = arith.constant 0 : index
    %3 = vector.load %arg7[%c0, %c0_1] : memref<2x10xf32, #tpu.memory_space<vmem>>, vector<2x10xf32>
    %c0_2 = arith.constant 0 : index
    %c0_3 = arith.constant 0 : index
    %4 = vector.load %arg3[%c0_2, %c0_3] : memref<2x32xf32, #tpu.memory_space<vmem>>, vector<2x32xf32>
    %5 = arith.truncf %4 : vector<2x32xf32> to vector<2x32xbf16>
    %c0_4 = arith.constant 0 : index
    %c0_5 = arith.constant 0 : index
    %6 = vector.load %arg4[%c0_4, %c0_5] : memref<32x10xbf16, #tpu.memory_space<vmem>>, vector<32x10xbf16>
    %cst = arith.constant dense<0.000000e+00> : vector<2x10xf32>
    %7 = tpu.matmul %5, %6, %cst {dimension_numbers = #tpu.dot_dimension_numbers<[1], [0], [0], [1], [0, 0, 1, 1], [], []>} : vector<2x32xbf16>, vector<32x10xbf16>, vector<2x10xf32> -> vector<2x10xf32>
    %8 = arith.addf %3, %7 : vector<2x10xf32>
    %c0_6 = arith.constant 0 : index
    %c0_7 = arith.constant 0 : index
    %9 = vector.load %arg7[%c0_6, %c0_7] : memref<2x10xf32, #tpu.memory_space<vmem>>, vector<2x10xf32>
    tpu.vector_store %arg7[%c0_6, %c0_7], %8 {strides = array<i32>} : memref<2x10xf32, #tpu.memory_space<vmem>>, vector<2x10xf32>,
    %c0_i32_8 = arith.constant 0 : i32
    %10 = arith.cmpi eq, %arg2, %c0_i32_8 : i32
    %11 = arith.extui %10 : i1 to i32
    %c0_i32_9 = arith.constant 0 : i32
    %12 = arith.cmpi ne, %11, %c0_i32_9 : i32
    scf.if %12 {
      %c0_10 = arith.constant 0 : index
      %c0_11 = arith.constant 0 : index
      %13 = vector.load %arg7[%c0_10, %c0_11] : memref<2x10xf32, #tpu.memory_space<vmem>>, vector<2x10xf32>
      %c0_12 = arith.constant 0 : index
      %c0_13 = arith.constant 0 : index
      %14 = vector.load %arg5[%c0_12, %c0_13] : memref<1x10xf32, #tpu.memory_space<vmem>>, vector<1x10xf32>
      %15 = vector.broadcast %14 : vector<1x10xf32> to vector<2x10xf32>
      %16 = arith.addf %13, %15 : vector<2x10xf32>
      %c0_14 = arith.constant 0 : index
      %c0_15 = arith.constant 0 : index
      %17 = vector.load %arg6[%c0_14, %c0_15] : memref<2x10xf32, #tpu.memory_space<vmem>>, vector<2x10xf32>
      tpu.vector_store %arg6[%c0_14, %c0_15], %16 {strides = array<i32>} : memref<2x10xf32, #tpu.memory_space<vmem>>, vector<2x10xf32>,
    } else {
    }
    return
  }
  func.func @transform_0(%arg0: i32, %arg1: i32, %arg2: i32) -> (i32, i32) {
    %c0_i32 = arith.constant 0 : i32
    return %arg0, %arg2 : i32, i32
  }
  func.func @transform_1(%arg0: i32, %arg1: i32, %arg2: i32) -> (i32, i32) {
    %c0_i32 = arith.constant 0 : i32
    return %arg2, %arg1 : i32, i32
  }
  func.func @transform_2(%arg0: i32, %arg1: i32, %arg2: i32) -> (i32, i32) {
    %c0_i32 = arith.constant 0 : i32
    %c0_i32_0 = arith.constant 0 : i32
    return %c0_i32, %arg1 : i32, i32
  }
  func.func @transform_3(%arg0: i32, %arg1: i32, %arg2: i32) -> (i32, i32) {
    %c0_i32 = arith.constant 0 : i32
    return %arg0, %arg1 : i32, i32
  }
}

</mosaic_0001>

<bundles_post_ra>
// kernel: transformer_cls_forward.6
= control target key start
LH: loop header
LB: loop body
LE: loop exit
PB: predicated region body
PF: predicated region fallthrough
CT: control target
= control target key end

     0   :  { %vm19_vm0 = vcmask 261120   ;;  %vm32_vm1 = vcmask 1041408   ;;  %v116_v0 = vmov 0.0   ;;  %vm117_vm2 = vmmov 0   ;;  %s162_s1 = inlined_call_operand.vmem [shape: bf16[4,32], index: 1, kind: input, shape index: {}]   ;;  %s163_s0 = inlined_call_operand.vmem [shape: f32[16,4], index: 0, kind: input, shape index: {}]   ;;  %s164_s2 = inlined_call_operand.vmem [shape: f32[1,32], index: 2, kind: input, shape index: {}]   ;;  %s165_s3 = inlined_call_operand.vmem [shape: f32[16,32], index: 3, kind: output, shape index: {}]  }
   0x1   :  { %20 = vst.msk [vmem:[#allocation2] sm:$0xff] %vm19_vm0, %v116_v0  ;;  %21 = vst.msk [vmem:[#allocation2 + $0x8] sm:$0xff] %vm19_vm0, %v116_v0  ;;  %108 = vmatprep.subr.bf16.mxu0 %v116_v0  ;;  %v27_v1 = vld [vmem:[%s162_s1] sm:$0x3]  ;;  %110 = vmatprep.mubr.msk.bf16.mxu0 %vm117_vm2, %v116_v0  ;;  %v25_v3 = vld [vmem:[%s163_s0 + $0x8] sm:$0xff]  ;;  %vm28_vm3 = vcmask 31744  }
   0x2   :  { %v24_v2 = vld [vmem:[%s163_s0] sm:$0xff]  ;;  %v34_v4 = vsel %vm32_vm1, %v27_v1, 0 }
   0x3   :  { %v26_v5 = vpack.c.bf16 %v25_v3, %v24_v2  ;;  %109 = vmatpush3.bf16.msra.mxu0 %v34_v4  ;;  %v105_v14 = vld [vmem:[%s164_s2] ss:$0 sm:$0xff] }
   0x6   :  { %111 = vmatmul.mubr.msk.bf16.vlgmr.msra.gmra.mrb[0].mxu0 %vm28_vm3, %v26_v5 }
   0x8   :  { %v22_v6 = vld [vmem:[#allocation2] sm:$0xff]  ;;  %v23_v8 = vld [vmem:[#allocation2 + $0x8] sm:$0xff] }
  0xd9   :  { %v70_v7 = vpop.f32.mrb[0].mxu0 }
  0xda   :  { %v77_v9 = vadd.f32 %v70_v7, %v22_v6  ;;  %v112_v10 = vpop.f32.mrb[1].mxu0 }
  0xdb   :  { %v73_v11 = vpop.f32.mrb[2].mxu0 }
  0xdc   :  { %80 = vst.msk [vmem:[#allocation2] sm:$0xff] %vm19_vm0, %v77_v9  ;;  %v78_v12 = vadd.f32 %v73_v11, %v23_v8  ;;  %v113_v13 = vpop.f32.mrb[3].mxu0 }
  0xde   :  { %81 = vst.msk [vmem:[#allocation2 + $0x8] sm:$0xff] %vm19_vm0, %v78_v12 }
  0xe3   :  { %v85_v15 = vld [vmem:[#allocation2] sm:$0xff] }
  0xe4   :  { %v94_v16 = vadd.f32 %v105_v14, %v85_v15 }
  0xe5   :  { %v86_v17 = vld [vmem:[#allocation2 + $0x8] sm:$0xff] }
  0xe6   :  { %v96_v18 = vmul.f32 5.656854, %v94_v16  ;;  %v95_v19 = vadd.f32 %v105_v14, %v86_v17 }
  0xe8   :  { %98 = vst.msk [vmem:[%s165_s3] sm:$0xff] %vm19_vm0, %v96_v18  ;;  %v97_v20 = vmul.f32 5.656854, %v95_v19 }
  0xea   :  { %99 = vst.msk [vmem:[%s165_s3 + $0x8] sm:$0xff] %vm19_vm0, %v97_v20 }

// kernel: transformer_cls_forward.11
= control target key start
LH: loop header
LB: loop body
LE: loop exit
PB: predicated region body
PF: predicated region fallthrough
CT: control target
= control target key end

     0   :  { %v159_v1 = vmov 0.0   ;;  %vm160_vm0 = vmmov 0   ;;  %vm20_vm1 = vcmask 74752   ;;  %s209_s0 = inlined_call_operand.vmem [shape: f32[2,32], index: 0, kind: input, shape index: {}]   ;;  %s210_s1 = inlined_call_operand.vmem [shape: bf16[32,10], index: 1, kind: input, shape index: {}]   ;;  %s211_s2 = inlined_call_operand.vmem [shape: f32[1,10], index: 2, kind: input, shape index: {}]   ;;  %s212_s3 = inlined_call_operand.hbm [shape: f32[2,10], index: 3, kind: output, shape index: {}]  }
   0x1   :  { %v133_v0 = vld [vmem:[%s210_s1] sm:$0xff]   ;;  %122 = vmatprep.subr.bf16.mxu0 %v159_v1  ;;  %v134_v2 = vld [vmem:[%s210_s1 + $0x8] sm:$0xff]   ;;  %126 = vmatprep.mubr.msk.bf16.mxu0 %vm160_vm0, %v159_v1 }
   0x2   :  { %123 = vmatpush3.bf16.msra.mxu0 %v133_v0  ;;  %v23_v3 = vld [vmem:[%s209_s0] sm:$0x3] }
   0x3   :  { %8 = vsyncpa [#allocation4], 0  ;;  %124 = vmatprep.subr.bf16.mxu0 %v159_v1  ;;  %21 = vst.msk [vmem:[#allocation2] sm:$0x3] %vm20_vm1, %v159_v1  ;;  %v24_v4 = vpack.c.bf16 %v23_v3, %v23_v3  ;;  %vm41_vm2 = vcmask 261120   ;;  %s161_s0 = smov [#allocation3]  }
   0x4   :  { %v118_v11 = vld [vmem:[%s211_s2] ss:$0 sm:$0xff]  ;;  %s107_s19 = sshll.u32 %s161_s0, 4  ;;  %s108_s19 = int_to_ptr.vmem [resolvable:$true] %s107_s19 }
   0x5   :  { %s135_s20 = scalar_lea.vmem %s108_s19, 32  ;;  %p140_p1 = scmp.lt.s32.totalorder %s108_s19, %s108_s19 }
   0x6   :  { %125 = vmatpush3.bf16.msra.mxu0 %v134_v2  ;;  %p136_p0 = scmp.ne.s32.totalorder %s108_s19, %s135_s20  ;;  %p141_p2 = scmp.lt.s32.totalorder %s135_s20, %s135_s20 }
   0x8   :  { %p142_p3 = por %p141_p2, %p140_p1 }
   0x9   :  { %127 = vmatmul.mubr.msk.bf16.vlgmr.msra.gmra.mrb[0].mxu0 %vm41_vm2, %v24_v4 }
   0xa   :  { %v22_v5 = vld [vmem:[#allocation2] sm:$0x3]  ;;  %p143_p4 = pnand %p142_p3, %p136_p0 }
  0xdc   :  { %v79_v6 = vpop.f32.mrb[0].mxu0 }
  0xdd   :  { %v85_v7 = vadd.f32 %v79_v6, %v22_v5  ;;  %v128_v8 = vpop.f32.mrb[1].mxu0 }
  0xde   :  { %v82_v9 = vpop.f32.mrb[2].mxu0 }
  0xdf   :  { %87 = vst.msk [vmem:[#allocation2] sm:$0x3] %vm20_vm1, %v85_v7  ;;  %v129_v10 = vpop.f32.mrb[3].mxu0 }
  0xe6   :  { %v91_v12 = vld [vmem:[#allocation2] sm:$0x3] }
  0xe7   :  { %v99_v13 = vadd.f32 %v118_v11, %v91_v12 }
  0xe9   :  { %100 = vst.msk [vmem:[#allocation3] sm:$0x3] %vm20_vm1, %v99_v13 }
  0xea   :  { %146 = shalt.err (!%p143_p4)
}
  0xeb   :  { %s147_s23 = scalar_lea.hbm %s212_s3, 32 }
  0xec   :  { %p148_p5 = scmp.ne.s32.totalorder %s212_s3, %s147_s23  ;;  %p151_p6 = scmp.lt.u32.totalorder %s147_s23, %s212_s3 }
  0xee   :  { %p153_p7 = pnand %p151_p6, %p148_p5 }
  0xf0   :  { %156 = shalt.err (!%p153_p7)
}
  0xf1   :  { %110 = dma.vmem_to_hbm [thread:$0]  %s108_s19, 32, %s212_s3, [#allocation4]  }
  0xf2   :  { %157 = dma.done.wait [#allocation4], 32  }
  0xf3   :  { %158 = vsyncadd [#allocation4], 4294967264 }
  0xf4   :  { %114 = vsyncpa [#allocation4], 1 }

// kernel: transformer_cls_forward.8
= control target key start
LH: loop header
LB: loop body
LE: loop exit
PB: predicated region body
PF: predicated region fallthrough
CT: control target
= control target key end

     0   :  { %s666_s24 = smov 0   ;;  %s727_s0 = inlined_call_operand.vmem [shape: f32[2,9,32], index: 0, kind: input, shape index: {}]   ;;  %s728_s1 = inlined_call_operand.vmem [shape: bf16[32,64], index: 1, kind: input, shape index: {}]   ;;  %s729_s2 = inlined_call_operand.vmem [shape: f32[1,64], index: 2, kind: input, shape index: {}]   ;;  %s730_s3 = inlined_call_operand.vmem [shape: bf16[64,32], index: 3, kind: input, shape index: {}]   ;;  %s731_s4 = inlined_call_operand.vmem [shape: f32[1,32], index: 4, kind: input, shape index: {}]   ;;  %s732_s5 = inlined_call_operand.vmem [shape: f32[1,32], index: 5, kind: input, shape index: {}]   ;;  %s733_s6 = inlined_call_operand.vmem [shape: f32[1,32], index: 6, kind: input, shape index: {}]   ;;  %s734_s7 = inlined_call_operand.vmem [shape: f32[2,9,32], index: 7, kind: output, shape index: {}]  }
   0x1 LB: > { %s543_s25 = sadd.s32 4294967295, %s622_s24   ;;  %p547_p0 = scmp.ge.s32.totalorder %s622_s24, 1  ;;  %s622_s24 = sphi %s666_s24, %s17_s24  }
   0x2   : > { %p237_p1 = scmp.lt.s32.totalorder %s622_s24, 3 }
   0x4   : > { %p238_p2 = pnand %p547_p0, %p237_p1 }
   0x5   : > { %v606_v0 = vld [vmem:[%s728_s1] sm:$0xff] (!%p238_p2)   ;;  %v624_v1 = vmov (!%p238_p2), 0.0   ;;  %v607_v2 = vld [vmem:[%s728_s1 + $0x8] sm:$0xff] (!%p238_p2)   ;;  %vm625_vm0 = vmmov (!%p238_p2), 0   ;;  %p269_p3 = scmp.lt.s32.totalorder (!%p238_p2), %s543_s25, 1  ;;  %vm306_vm1 = vcmask (!%p238_p2), 261120  }
   0x6   : > { %241 = sbr.rel (%p238_p2) target bundleno = 773 (0x305), region = 48  ;;  %576 = vmatprep.subr.bf16.mxu0 (!%p238_p2), %v624_v1  ;;  %584 = vmatprep.subr.bf16.mxu1 (!%p238_p2), %v624_v1  ;;  %v608_v3 = vld [vmem:[%s730_s3] sm:$0xff] (!%p238_p2)   ;;  %v609_v4 = vld [vmem:[%s730_s3 + $0x8] sm:$0xff] (!%p238_p2)   ;;  %v610_v8 = vld [vmem:[%s730_s3 + $0x10] sm:$0xff] (!%p238_p2)   ;;  %vm393_vm2 = vcmask (!%p238_p2), 523264   ;;  %vm445_vm3 = vcmask (!%p238_p2), 253952  }
   0x7   : > { %577 = vmatpush3.bf16.msra.mxu0 (!%p238_p2), %v606_v0  ;;  %580 = vmatprep.mubr.msk.bf16.mxu0 (!%p238_p2), %vm625_vm0, %v624_v1  ;;  %v611_v9 = vld [vmem:[%s730_s3 + $0x18] sm:$0xff] (!%p238_p2)   ;;  %v552_v10 = vld [vmem:[%s729_s2] ss:$0 sm:$0xff] (!%p238_p2) }
   0x8   : > { %578 = vmatprep.subr.bf16.mxu0 (!%p238_p2), %v624_v1  ;;  %592 = vmatprep.mubr.msk.bf16.mxu1 (!%p238_p2), %vm625_vm0, %v624_v1  ;;  %v556_v20 = vld [vmem:[%s731_s4] ss:$0 sm:$0xff] (!%p238_p2) }
   0x9   : > { %585 = vmatpush3.bf16.msra.mxu1 (!%p238_p2), %v608_v3  ;;  %v562_v48 = vld [vmem:[%s732_s5] ss:$0 sm:$0xff] (!%p238_p2) }
   0xa   : > { %586 = vmatprep.subr.bf16.mxu1 (!%p238_p2), %v624_v1  ;;  %v563_v50 = vld [vmem:[%s733_s6] ss:$0 sm:$0xff] (!%p238_p2) }
   0xb   : > { %579 = vmatpush3.bf16.msra.mxu0 (!%p238_p2), %v607_v2 }
   0xd   : > { %s736_s25 = smov (!%p269_p3, %s543_s25), 1  ;;  %587 = vmatpush3.bf16.msra.mxu1 %v609_v4 }
   0xe   : > { %s566_s11 = sshll.u32 %s736_s25, 4  ;;  %588 = vmatprep.subr.bf16.mxu1 %v624_v1 }
   0xf   : > { %s273_s14 = scalar_lea.vmem %s727_s0, %s566_s11  ;;  %s278_s8 = scalar_lea.vmem %s734_s7, %s566_s11 }
  0x10   : > { %v280_v5 = vld [vmem:[%s273_s14] sm:$0xff]  ;;  %v281_v6 = vld [vmem:[%s273_s14 + $0x8] sm:$0x1] }
  0x11   : > { %v282_v7 = vpack.c.bf16 %v281_v6, %v280_v5  ;;  %589 = vmatpush3.bf16.msra.mxu1 %v610_v8 }
  0x12   : > { %590 = vmatprep.subr.bf16.mxu1 %v624_v1 }
  0x13   : > { %581 = vmatmul.mubr.msk.bf16.vlgmr.msra.gmra.mrb[0].mxu0 %vm306_vm1, %v282_v7 }
  0x15   : > { %591 = vmatpush3.bf16.msra.mxu1 %v611_v9 }
  0xe6   : > { %v344_v11 = vpop.f32.mrb[0].mxu0 }
  0xe7   : > { %v345_v12 = vadd.f32 %v552_v10, %v344_v11  ;;  %v582_v13 = vpop.f32.mrb[1].mxu0 }
  0xe8   : > { %v347_v14 = vpop.f32.mrb[2].mxu0 }
  0xe9   : > { %v348_v15 = vadd.f32 %v552_v10, %v347_v14  ;;  %v583_v16 = vpop.f32.mrb[3].mxu0  ;;  %v351_v17 = vmax.f32 %v345_v12, 0.0 }
  0xeb   : > { %v352_v18 = vmax.f32 %v348_v15, 0.0 }
  0xed   : > { %v353_v19 = vpack.c.bf16 %v352_v18, %v351_v17 }
  0xef   : > { %593 = vmatmul.mubr.msk.bf16.vlgmr.msra.gmra.mrb[0].mxu1 %vm393_vm2, %v353_v19 }
 0x1c2   : > { %v431_v21 = vpop.f32.mrb[0].mxu1 }
 0x1c3   : > { %v432_v22 = vadd.f32 %v556_v20, %v431_v21  ;;  %v594_v23 = vpop.f32.mrb[1].mxu1 }
 0x1c4   : > { %v434_v24 = vpop.f32.mrb[2].mxu1 }
 0x1c5   : > { %v435_v25 = vadd.f32 %v556_v20, %v434_v24  ;;  %v595_v26 = vpop.f32.mrb[3].mxu1  ;;  %v438_v27 = vadd.f32 %v432_v22, %v280_v5 }
 0x1c7   : > { %v442_v28 = vsel %vm306_vm1, %v438_v27, 0.0  ;;  %v439_v29 = vadd.f32 %v435_v25, %v281_v6 }
 0x1c8   : > { %443 = vadd.xlane.f32.xlu0 %v442_v28 }
 0x1c9   : > { %v446_v30 = vsel %vm445_vm3, %v439_v29, 0.0 }
 0x1cc   : > { %447 = vadd.xlane.f32.xlu0 %v446_v30 }
 0x255   : > { %v444_v31 = vpop.xlane.xlu0 %443 }
 0x256   : > { %v450_v32 = vmul.f32 0.03125, %v444_v31 }
 0x258   : > { %v452_v33 = vsub.f32 %v438_v27, %v450_v32 }
 0x259   : > { %v448_v34 = vpop.xlane.xlu0 %447 }
 0x25a   : > { %v451_v35 = vmul.f32 0.03125, %v448_v34  ;;  %v454_v36 = vmul.f32 %v452_v33, %v452_v33 }
 0x25c   : > { %v453_v37 = vsub.f32 %v439_v29, %v451_v35  ;;  %v456_v38 = vsel %vm306_vm1, %v454_v36, 0.0 }
 0x25d   : > { %457 = vadd.xlane.f32.xlu1 %v456_v38 }
 0x25e   : > { %v455_v39 = vmul.f32 %v453_v37, %v453_v37 }
 0x260   : > { %v459_v40 = vsel %vm445_vm3, %v455_v39, 0.0 }
 0x261   : > { %460 = vadd.xlane.f32.xlu1 %v459_v40 }
 0x2ea   : > { %v458_v41 = vpop.xlane.xlu1 %457 }
 0x2eb   : > { %v462_v42 = vmul.f32 0.03125, %v458_v41 }
 0x2ed   : > { %v464_v43 = vadd.f32 1e-05, %v462_v42 }
 0x2ee   : > { %v461_v44 = vpop.xlane.xlu1 %460 }
 0x2ef   : > { %612 = vrsqrt.f32 %v464_v43  ;;  %v463_v45 = vmul.f32 0.03125, %v461_v44 }
 0x2f1   : > { %v465_v46 = vadd.f32 1e-05, %v463_v45 }
 0x2f3   : > { %614 = vrsqrt.f32 %v465_v46 }
 0x2f9   : > { %v613_v47 = vpop.eup %612 }
 0x2fa   : > { %v468_v49 = vmul.f32 %v613_v47, %v452_v33 }
 0x2fc   : > { %v476_v51 = vmul.f32 %v562_v48, %v468_v49 }
 0x2fd   : > { %v615_v52 = vpop.eup %614 }
 0x2fe   : > { %v484_v53 = vadd.f32 %v563_v50, %v476_v51  ;;  %v469_v54 = vmul.f32 %v615_v52, %v453_v37 }
 0x300   : > { %486 = vst.msk [vmem:[%s278_s8] sm:$0xff] %vm306_vm1, %v484_v53  ;;  %v477_v55 = vmul.f32 %v562_v48, %v469_v54 }
 0x302   : > { %v485_v56 = vadd.f32 %v563_v50, %v477_v55 }
 0x304   : > { %487 = vst.msk [vmem:[%s278_s8 + $0x8] sm:$0x1] %vm445_vm3, %v485_v56 }
 0x305 PF: > { %s17_s24 = sadd.s32 1, %s622_s24  }
 0x306   : > { %p14_p4 = scmp.ge.s32.totalorder %s17_s24, 4  }
 0x308   :  { %16 = sbr.rel (!%p14_p4) target bundleno = 1 (0x1), region = 78 }

// kernel: transformer_cls_forward.7
= control target key start
LH: loop header
LB: loop body
LE: loop exit
PB: predicated region body
PF: predicated region fallthrough
CT: control target
= control target key end

     0   :  { %s1429_s24 = smov 0   ;;  %s1603_s0 = inlined_call_operand.vmem [shape: f32[2,9,32], index: 0, kind: input, shape index: {}]   ;;  %s1604_s1 = inlined_call_operand.vmem [shape: bf16[32,96], index: 1, kind: input, shape index: {}]   ;;  %s1605_s2 = inlined_call_operand.vmem [shape: f32[1,96], index: 2, kind: input, shape index: {}]   ;;  %s1606_s3 = inlined_call_operand.vmem [shape: bf16[32,32], index: 3, kind: input, shape index: {}]   ;;  %s1607_s4 = inlined_call_operand.vmem [shape: f32[1,32], index: 4, kind: input, shape index: {}]   ;;  %s1608_s5 = inlined_call_operand.vmem [shape: f32[1,32], index: 5, kind: input, shape index: {}]   ;;  %s1609_s6 = inlined_call_operand.vmem [shape: f32[1,32], index: 6, kind: input, shape index: {}]   ;;  %s1610_s7 = inlined_call_operand.vmem [shape: f32[2,9,32], index: 7, kind: output, shape index: {}]  }
   0x1 LB: > { %s1168_s25 = sadd.s32 4294967295, %s1373_s24   ;;  %p1172_p0 = scmp.ge.s32.totalorder %s1373_s24, 1  ;;  %s1373_s24 = sphi %s1429_s24, %s17_s24  }
   0x2   : > { %p237_p1 = scmp.lt.s32.totalorder %s1373_s24, 3 }
   0x4   : > { %p238_p2 = pnand %p1172_p0, %p237_p1 }
   0x5   : > { %v1329_v0 = vld [vmem:[%s1604_s1] sm:$0xff] (!%p238_p2)   ;;  %v1375_v1 = vmov (!%p238_p2), 0.0   ;;  %v1330_v2 = vld [vmem:[%s1604_s1 + $0x8] sm:$0xff] (!%p238_p2)   ;;  %vm1376_vm0 = vmmov (!%p238_p2), 0   ;;  %p269_p3 = scmp.lt.s32.totalorder (!%p238_p2), %s1168_s25, 1  ;;  %vm306_vm1 = vcmask (!%p238_p2), 261120  }
   0x6   : > { %241 = sbr.rel (%p238_p2) target bundleno = 2480 (0x9b0), region = 48  ;;  %1227 = vmatprep.subr.bf16.mxu0 (!%p238_p2), %v1375_v1  ;;  %1235 = vmatprep.subr.bf16.mxu1 (!%p238_p2), %v1375_v1  ;;  %v1177_v6 = vld [vmem:[%s1605_s2] ss:$0 sm:$0xff] (!%p238_p2)  ;;  %s1377_s13 = smov (!%p238_p2), 96   ;;  %vm358_vm2 = vcmask (!%p238_p2), 64512   ;;  %vm406_vm3 = vcmask (!%p238_p2), 72704  }
   0x7   : > { %1228 = vmatpush3.bf16.msra.mxu0 (!%p238_p2), %v1329_v0  ;;  %1231 = vmatprep.mubr.msk.bf16.mxu0 (!%p238_p2), %vm1376_vm0, %v1375_v1  ;;  %s1378_s14 = smov (!%p238_p2), 120   ;;  %s1379_s15 = smov (!%p238_p2), 88   ;;  %vm410_vm4 = vcmask (!%p238_p2), 65536   ;;  %vm432_vm5 = vcmask (!%p238_p2), 1043456   ;;  %vm433_vm6 = vcmask (!%p238_p2), 1044480   ;;  %v1382_v40 = vmov (!%p238_p2), 65535  }
   0x8   : > { %1229 = vmatprep.subr.bf16.mxu0 (!%p238_p2), %v1375_v1  ;;  %1237 = vmatprep.mubr.msk.bf16.mxu1 (!%p238_p2), %vm1376_vm0, %v1375_v1  ;;  %s1380_s16 = smov (!%p238_p2), 56   ;;  %s1381_s17 = smov (!%p238_p2), 64   ;;  %v434_v41 = vsel (!%p238_p2), %vm432_vm5, 4294967295, %v1382_v40  ;;  %v485_v63 = vld [vmem:[%s1606_s3] sm:$0xf] (!%p238_p2)  ;;  %vm1070_vm7 = vcmask (!%p238_p2), 253952  }
   0x9   : > { %v1496_v45 = vsel (!%p238_p2), %vm433_vm6, %v434_v41, 0  ;;  %s1383_s18 = smov (!%p238_p2), 112   ;;  %s1384_s19 = smov (!%p238_p2), 80   ;;  %v663_v0 = vsel (!%p238_p2), %vm432_vm5, %v485_v63, 0 }
   0xa   : > { %s1385_s26 = smov (!%p238_p2), 72   ;;  %s1386_s27 = smov (!%p238_p2), 48  }
   0xb   : > { %1230 = vmatpush3.bf16.msra.mxu0 (!%p238_p2), %v1330_v2  ;;  %v611_v2 = vld [vmem:[%s1606_s3 + $0x4] sm:$0xf] (!%p238_p2)  ;;  %s1387_s28 = smov (!%p238_p2), 104   ;;  %s1388_s29 = smov (!%p238_p2), 40  }
   0xc   : > { %1241 = vmatprep.subr.bf16.mxu0 (!%p238_p2), %v1375_v1 }
   0xd   : > { %s1612_s25 = smov (!%p269_p3, %s1168_s25), 1 }
   0xe   : > { %s1198_s30 = sshll.u32 %s1612_s25, 4 }
   0xf   : > { %s273_s10 = scalar_lea.vmem %s1603_s0, %s1198_s30  ;;  %s278_s20 = scalar_lea.vmem %s1610_s7, %s1198_s30 }
  0x10   : > { %v1459_v3 = vld [vmem:[%s273_s10] sm:$0xff]  ;;  %v1461_v4 = vld [vmem:[%s273_s10 + $0x8] sm:$0x1] }
  0x11   : > { %v282_v5 = vpack.c.bf16 %v1461_v4, %v1459_v3 }
  0x13   : > { %1232 = vmatmul.mubr.msk.bf16.vlgmr.msra.gmra.mrb[0].mxu0 %vm306_vm1, %v282_v5  ;;  %v616_v5 = vsel %vm432_vm5, %v611_v2, 0  ;;  %v830_v2 = vld [vmem:[%s1606_s3 + $0x8] sm:$0xf] }
  0x14   : > { %1243 = vmatprep.mubr.msk.bf16.mxu0 %vm1376_vm0, %v1375_v1 }
  0xe6   : > { %v344_v7 = vpop.f32.mrb[0].mxu0 }
  0xe7   : > { %v345_v8 = vadd.f32 %v1177_v6, %v344_v7  ;;  %v1233_v9 = vpop.f32.mrb[1].mxu0 }
  0xe8   : > { %v347_v10 = vpop.f32.mrb[2].mxu0 }
  0xe9   : > { %v348_v11 = vadd.f32 %v1177_v6, %v347_v10  ;;  %v1234_v12 = vpop.f32.mrb[3].mxu0  ;;  %v351_v13 = vmul.f32 0.35355338, %v345_v8 }
  0xeb   : > { %v352_v14 = vmul.f32 0.35355338, %v348_v11  ;;  %v1471_v15 = vpack.c.bf16 %v348_v11, %v345_v8 }
  0xed   : > { %v1473_v16 = vpack.c.bf16 %v352_v14, %v351_v13  ;;  %356 = vrot.lane.b32.xlu0 %v1471_v15, %s1377_s13 }
  0xef   : > { %487 = vrot.lane.b32.xlu1 %v1473_v16, %s1378_s14 }
  0xf1   : > { %489 = vrot.lane.b32.xlu0 %v1471_v15, %s1379_s15 }
 0x15f   : > { %v357_v17 = vpop.permute.xlu0 %356 }
 0x160   : > { %v363_v18 = vsel %vm358_vm2, %v357_v17, 0 }
 0x161   : > { %1236 = vmatpush3.bf16.xpose.msra.mxu1 %v363_v18  ;;  %v488_v21 = vpop.permute.xlu1 %487 }
 0x162   : > { %1247 = vmatprep.subr.bf16.mxu1 %v1375_v1 }
 0x163   : > { %v490_v19 = vpop.permute.xlu0 %489 }
 0x164   : > { %v495_v20 = vsel %vm358_vm2, %v490_v19, 0 }
 0x168   : > { %1238 = vmatmul.mubr.msk.bf16.vlgmr.msra.gmra.mrb[0].mxu1 %vm358_vm2, %v1473_v16 }
 0x169   : > { %1248 = vmatpush3.bf16.xpose.msra.mxu1 %v495_v20  ;;  %1249 = vmatprep.mubr.msk.bf16.mxu1 %vm1376_vm0, %v1375_v1 }
 0x16a   : > { %1259 = vmatprep.subr.bf16.mxu1 %v1375_v1 }
 0x170   : > { %1250 = vmatmul.mubr.msk.bf16.vlgmr.msra.gmra.mrb[4].mxu1 %vm358_vm2, %v488_v21 }
 0x171   : > { %1261 = vmatprep.mubr.msk.bf16.mxu1 %vm1376_vm0, %v1375_v1  ;;  %1260 = vmatpush3.bf16.msra.mxu1 %v616_v5  ;;  %v835_v5 = vsel %vm432_vm5, %v830_v2, 0 }
 0x172   : > { %1271 = vmatprep.subr.bf16.mxu1 %v1375_v1 }
 0x23b   : > { %v399_v22 = vpop.f32.mrb[0].mxu1 }
 0x23c   : > { %v1239_v23 = vpop.f32.mrb[1].mxu1  ;;  %v407_v24 = vsel %vm406_vm3, %v399_v22, -inf }
 0x23d   : > { %408 = vmax.xlane.f32.xlu1 %v407_v24  ;;  %v402_v25 = vpop.f32.mrb[2].mxu1 }
 0x23e   : > { %v1240_v26 = vpop.f32.mrb[3].mxu1  ;;  %v411_v27 = vsel %vm410_vm4, %v402_v25, -inf }
 0x23f   : > { %412 = vmax.xlane.f32.xlu0 %v411_v27 }
 0x243   : > { %v531_v28 = vpop.f32.mrb[4].mxu1 }
 0x244   : > { %v1251_v29 = vpop.f32.mrb[5].mxu1  ;;  %v538_v30 = vsel %vm406_vm3, %v531_v28, -inf }
 0x245   : > { %539 = vmax.xlane.f32.xlu0 %v538_v30  ;;  %v534_v31 = vpop.f32.mrb[6].mxu1 }
 0x246   : > { %v1252_v32 = vpop.f32.mrb[7].mxu1  ;;  %v541_v33 = vsel %vm410_vm4, %v534_v31, -inf }
 0x247   : > { %542 = vmax.xlane.f32.xlu1 %v541_v33 }
 0x258   : > { %557 = vrot.lane.b32.xlu1 %v1471_v15, %s1380_s16 }
 0x25b   : > { %427 = vrot.lane.b32.xlu0 %v1471_v15, %s1381_s17 }
 0x2ca   : > { %v409_v34 = vpop.xlane.xlu1 %408 }
 0x2cb   : > { %v414_v35 = vsub.f32 %v399_v22, %v409_v34 }
 0x2cc   : > { %v413_v36 = vpop.xlane.xlu0 %412 }
 0x2cd   : > { %v416_v37 = vmul.f32 1.442695, %v414_v35  ;;  %v415_v38 = vsub.f32 %v402_v25, %v413_v36 }
 0x2cf   : > { %v418_v39 = vmul.f32 1.442695, %v415_v38  ;;  %1331 = vpow2.f32 %v416_v37 }
 0x2d1   : > { %1333 = vpow2.f32 %v418_v39 }
 0x2d2   : > { %v540_v42 = vpop.xlane.xlu0 %539 }
 0x2d3   : > { %v544_v43 = vsub.f32 %v531_v28, %v540_v42 }
 0x2d4   : > { %v543_v44 = vpop.xlane.xlu1 %542 }
 0x2d5   : > { %v546_v46 = vmul.f32 1.442695, %v544_v43  ;;  %v545_v47 = vsub.f32 %v534_v31, %v543_v44 }
 0x2d6   : > { %v428_v48 = vpop.permute.xlu0 %427 }
 0x2d7   : > { %1335 = vpow2.f32 %v546_v46  ;;  %v548_v49 = vmul.f32 1.442695, %v545_v47  ;;  %v437_v50 = vand.u32 %v1496_v45, %v428_v48 }
 0x2d8   : > { %v558_v52 = vpop.permute.xlu1 %557 }
 0x2d9   : > { %1337 = vpow2.f32 %v548_v49  ;;  %1242 = vmatpush3.bf16.msra.mxu0 %v437_v50  ;;  %v1332_v51 = vpop.eup %1331  ;;  %v563_v55 = vand.u32 %v558_v52, %v1496_v45 }
 0x2da   : > { %1253 = vmatprep.subr.bf16.mxu0 %v1375_v1  ;;  %v420_v61 = vsel %vm406_vm3, %v1332_v51, 0.0 }
 0x2db   : > { %v1334_v53 = vpop.eup %1333 }
 0x2dc   : > { %v426_v54 = vpack.c.bf16 %v1334_v53, %v1332_v51  ;;  %v423_v62 = vsel %vm410_vm4, %v1334_v53, 0.0 }
 0x2de   : > { %1244 = vmatmul.mubr.msk.bf16.vlgmr.msra.gmra.mrb[4].mxu0 %vm406_vm3, %v426_v54 }
 0x2df   : > { %1254 = vmatpush3.bf16.msra.mxu0 %v563_v55  ;;  %1255 = vmatprep.mubr.msk.bf16.mxu0 %vm1376_vm0, %v1375_v1 }
 0x2e0   : > { %1265 = vmatprep.subr.bf16.mxu0 %v1375_v1 }
 0x2e1   : > { %v1336_v56 = vpop.eup %1335 }
 0x2e2   : > { %v550_v57 = vsel %vm406_vm3, %v1336_v56, 0.0 }
 0x2e3   : > { %v1338_v58 = vpop.eup %1337  ;;  %551 = vadd.xlane.f32.xlu1 %v550_v57 }
 0x2e4   : > { %v553_v59 = vsel %vm410_vm4, %v1338_v58, 0.0  ;;  %v556_v60 = vpack.c.bf16 %v1338_v58, %v1336_v56 }
 0x2e5   : > { %554 = vadd.xlane.f32.xlu0 %v553_v59 }
 0x2e6   : > { %1256 = vmatmul.mubr.msk.bf16.vlgmr.msra.gmra.mrb[8].mxu0 %vm406_vm3, %v556_v60 }
 0x2e7   : > { %1267 = vmatprep.mubr.msk.bf16.mxu0 %vm1376_vm0, %v1375_v1  ;;  %1266 = vmatpush3.bf16.msra.mxu0 %v663_v0 }
 0x2e8   : > { %1277 = vmatprep.subr.bf16.mxu0 %v1375_v1 }
 0x2f4   : > { %706 = vrot.lane.b32.xlu1 %v1473_v16, %s1383_s18 }
 0x2fb   : > { %708 = vrot.lane.b32.xlu0 %v1471_v15, %s1384_s19 }
 0x318   : > { %421 = vadd.xlane.f32.xlu1 %v420_v61 }
 0x31a   : > { %424 = vadd.xlane.f32.xlu0 %v423_v62 }
 0x370   : > { %v552_v6 = vpop.xlane.xlu1 %551 }
 0x372   : > { %v555_v7 = vpop.xlane.xlu0 %554 }
 0x374   : > { %v707_v8 = vpop.permute.xlu1 %706 }
 0x376   : > { %v709_v9 = vpop.permute.xlu0 %708 }
 0x377   : > { %v714_v32 = vsel %vm358_vm2, %v709_v9, 0 }
 0x3a5   : > { %v422_v10 = vpop.xlane.xlu1 %421 }
 0x3a6   : > { %1339 = vrcp.f32 %v422_v10 }
 0x3a7   : > { %v425_v11 = vpop.xlane.xlu0 %424 }
 0x3a8   : > { %1341 = vrcp.f32 %v425_v11 }
 0x3a9   : > { %1343 = vrcp.f32 %v552_v6 }
 0x3aa   : > { %1345 = vrcp.f32 %v555_v7 }
 0x3b0   : > { %v1340_v12 = vpop.eup %1339 }
 0x3b1   : > { %v473_v13 = vpop.f32.mrb[4].mxu0 }
 0x3b2   : > { %v1342_v14 = vpop.eup %1341  ;;  %v1245_v17 = vpop.f32.mrb[5].mxu0  ;;  %v482_v19 = vmul.f32 %v1340_v12, %v473_v13 }
 0x3b3   : > { %v476_v18 = vpop.f32.mrb[6].mxu0  ;;  %v1344_v24 = vpop.eup %1343 }
 0x3b4   : > { %v483_v20 = vmul.f32 %v1342_v14, %v476_v18  ;;  %v1246_v21 = vpop.f32.mrb[7].mxu0  ;;  %v1346_v26 = vpop.eup %1345 }
 0x3b6   : > { %v484_v22 = vpack.c.bf16 %v483_v20, %v482_v19 }
 0x3b8   : > { %1268 = vmatmul.mubr.msk.bf16.vlgmr.msra.gmra.mrb[12].mxu0 %vm358_vm2, %v484_v22 }
 0x3b9   : > { %v599_v23 = vpop.f32.mrb[8].mxu0  ;;  %1279 = vmatprep.mubr.msk.bf16.mxu0 %vm1376_vm0, %v1375_v1 }
 0x3ba   : > { %v1257_v25 = vpop.f32.mrb[9].mxu0  ;;  %v608_v28 = vmul.f32 %v1344_v24, %v599_v23 }
 0x3bb   : > { %v602_v27 = vpop.f32.mrb[10].mxu0 }
 0x3bc   : > { %v609_v29 = vmul.f32 %v1346_v26, %v602_v27  ;;  %v1258_v30 = vpop.f32.mrb[11].mxu0 }
 0x3be   : > { %v610_v31 = vpack.c.bf16 %v609_v29, %v608_v28 }
 0x3c0   : > { %1262 = vmatmul.mubr.msk.bf16.vlgmr.msra.gmra.mrb[8].mxu1 %vm358_vm2, %v610_v31 }
 0x3c1   : > { %1272 = vmatpush3.bf16.xpose.msra.mxu1 %v714_v32  ;;  %1273 = vmatprep.mubr.msk.bf16.mxu1 %vm1376_vm0, %v1375_v1 }
 0x3c2   : > { %1283 = vmatprep.subr.bf16.mxu1 %v1375_v1 }
 0x3c8   : > { %1274 = vmatmul.mubr.msk.bf16.vlgmr.msra.gmra.mrb[12].mxu1 %vm358_vm2, %v707_v8 }
 0x3c9   : > { %1285 = vmatprep.mubr.msk.bf16.mxu1 %vm1376_vm0, %v1375_v1  ;;  %1284 = vmatpush3.bf16.msra.mxu1 %v835_v5 }
 0x3ca   : > { %1295 = vmatprep.subr.bf16.mxu1 %v1375_v1 }
 0x48b   : > { %v699_v33 = vpop.f32.mrb[12].mxu0 }
 0x48c   : > { %v1269_v34 = vpop.f32.mrb[13].mxu0 }
 0x48d   : > { %v702_v35 = vpop.f32.mrb[14].mxu0 }
 0x48e   : > { %v1270_v36 = vpop.f32.mrb[15].mxu0 }
 0x493   : > { %v652_v37 = vpop.f32.mrb[8].mxu1 }
 0x494   : > { %v1535_v38 = vadd.f32 %v699_v33, %v652_v37  ;;  %v1263_v39 = vpop.f32.mrb[9].mxu1 }
 0x495   : > { %v655_v40 = vpop.f32.mrb[10].mxu1 }
 0x496   : > { %v1537_v41 = vadd.f32 %v702_v35, %v655_v40  ;;  %v1264_v42 = vpop.f32.mrb[11].mxu1 }
 0x49b   : > { %v750_v43 = vpop.f32.mrb[12].mxu1 }
 0x49c   : > { %v1275_v44 = vpop.f32.mrb[13].mxu1  ;;  %v757_v46 = vsel %vm406_vm3, %v750_v43, -inf }
 0x49d   : > { %758 = vmax.xlane.f32.xlu0 %v757_v46  ;;  %v753_v47 = vpop.f32.mrb[14].mxu1 }
 0x49e   : > { %v1276_v48 = vpop.f32.mrb[15].mxu1  ;;  %v760_v49 = vsel %vm410_vm4, %v753_v47, -inf }
 0x49f   : > { %761 = vmax.xlane.f32.xlu1 %v760_v49 }
 0x4b0   : > { %882 = vrot.lane.b32.xlu1 %v1471_v15, %s1385_s26 }
 0x4b3   : > { %776 = vrot.lane.b32.xlu0 %v1471_v15, %s1386_s27 }
 0x4b4   : > { %880 = vrot.lane.b32.xlu1 %v1473_v16, %s1387_s28 }
 0x52a   : > { %v759_v50 = vpop.xlane.xlu0 %758 }
 0x52b   : > { %v763_v51 = vsub.f32 %v750_v43, %v759_v50  ;;  %v1004_v43 = vld [vmem:[%s1606_s3 + $0xc] sm:$0xf] }
 0x52c   : > { %v762_v52 = vpop.xlane.xlu1 %761  ;;  %v1009_v44 = vsel %vm432_vm5, %v1004_v43, 0 }
 0x52d   : > { %v765_v53 = vmul.f32 1.442695, %v763_v51  ;;  %v764_v54 = vsub.f32 %v753_v47, %v762_v52 }
 0x52e   : > { %v777_v55 = vpop.permute.xlu0 %776 }
 0x52f   : > { %1347 = vpow2.f32 %v765_v53  ;;  %v767_v56 = vmul.f32 1.442695, %v764_v54  ;;  %v782_v57 = vand.u32 %v777_v55, %v1496_v45 }
 0x530   : > { %v883_v61 = vpop.permute.xlu1 %882 }
 0x531   : > { %1349 = vpow2.f32 %v767_v56  ;;  %1278 = vmatpush3.bf16.msra.mxu0 %v782_v57  ;;  %v888_v63 = vsel %vm358_vm2, %v883_v61, 0  ;;  %v1193_v56 = vld [vmem:[%s1607_s4] ss:$0 sm:$0xff] }
 0x532   : > { %1289 = vmatprep.subr.bf16.mxu0 %v1375_v1 }
 0x534   : > { %v881_v0 = vpop.permute.xlu1 %880 }
 0x539   : > { %v1348_v58 = vpop.eup %1347 }
 0x53a   : > { %v769_v59 = vsel %vm406_vm3, %v1348_v58, 0.0 }
 0x53b   : > { %v1350_v60 = vpop.eup %1349  ;;  %770 = vadd.xlane.f32.xlu0 %v769_v59 }
 0x53c   : > { %v772_v16 = vsel %vm410_vm4, %v1350_v60, 0.0  ;;  %v775_v62 = vpack.c.bf16 %v1350_v60, %v1348_v58 }
 0x53d   : > { %773 = vadd.xlane.f32.xlu1 %v772_v16 }
 0x53e   : > { %1280 = vmatmul.mubr.msk.bf16.vlgmr.msra.gmra.mrb[16].mxu0 %vm406_vm3, %v775_v62 }
 0x53f   : > { %1290 = vmatpush3.bf16.xpose.msra.mxu0 %v888_v63  ;;  %1291 = vmatprep.mubr.msk.bf16.mxu0 %vm1376_vm0, %v1375_v1 }
 0x540   : > { %1301 = vmatprep.subr.bf16.mxu0 %v1375_v1 }
 0x546   : > { %1292 = vmatmul.mubr.msk.bf16.vlgmr.msra.gmra.mrb[20].mxu0 %vm358_vm2, %v881_v0 }
 0x547   : > { %1303 = vmatprep.mubr.msk.bf16.mxu0 %vm1376_vm0, %v1375_v1  ;;  %1302 = vmatpush3.bf16.msra.mxu0 %v1009_v44 }
 0x54e   : > { %950 = vrot.lane.b32.xlu1 %v1471_v15, %s1388_s29 }
 0x5c8   : > { %v771_v6 = vpop.xlane.xlu0 %770 }
 0x5c9   : > { %1351 = vrcp.f32 %v771_v6 }
 0x5ca   : > { %v774_v7 = vpop.xlane.xlu1 %773 }
 0x5cb   : > { %1353 = vrcp.f32 %v774_v7 }
 0x5ce   : > { %v951_v13 = vpop.permute.xlu1 %950 }
 0x5cf   : > { %v956_v19 = vand.u32 %v951_v13, %v1496_v45 }
 0x5d3   : > { %v1352_v9 = vpop.eup %1351 }
 0x5d5   : > { %v1354_v11 = vpop.eup %1353 }
 0x611   : > { %v818_v8 = vpop.f32.mrb[16].mxu0 }
 0x612   : > { %v1281_v10 = vpop.f32.mrb[17].mxu0  ;;  %v827_v15 = vmul.f32 %v1352_v9, %v818_v8 }
 0x613   : > { %v821_v12 = vpop.f32.mrb[18].mxu0 }
 0x614   : > { %v828_v14 = vmul.f32 %v1354_v11, %v821_v12  ;;  %v1282_v17 = vpop.f32.mrb[19].mxu0 }
 0x616   : > { %v829_v18 = vpack.c.bf16 %v828_v14, %v827_v15 }
 0x618   : > { %1286 = vmatmul.mubr.msk.bf16.vlgmr.msra.gmra.mrb[16].mxu1 %vm358_vm2, %v829_v18 }
 0x619   : > { %1296 = vmatpush3.bf16.msra.mxu1 %v956_v19  ;;  %v924_v20 = vpop.f32.mrb[20].mxu0  ;;  %1297 = vmatprep.mubr.msk.bf16.mxu1 %vm1376_vm0, %v1375_v1 }
 0x61a   : > { %v1293_v21 = vpop.f32.mrb[21].mxu0  ;;  %v931_v22 = vsel %vm406_vm3, %v924_v20, -inf }
 0x61b   : > { %932 = vmax.xlane.f32.xlu0 %v931_v22  ;;  %v927_v23 = vpop.f32.mrb[22].mxu0  ;;  %v1194_v22 = vld [vmem:[%s1608_s5] ss:$0 sm:$0xff] }
 0x61c   : > { %v1294_v24 = vpop.f32.mrb[23].mxu0  ;;  %v934_v25 = vsel %vm410_vm4, %v927_v23, -inf }
 0x61d   : > { %v1195_v24 = vld [vmem:[%s1609_s6] ss:$0 sm:$0xff] }
 0x61f   : > { %935 = vmax.xlane.f32.xlu0 %v934_v25 }
 0x6a8   : > { %v933_v26 = vpop.xlane.xlu0 %932 }
 0x6a9   : > { %v937_v27 = vsub.f32 %v924_v20, %v933_v26 }
 0x6ab   : > { %v939_v28 = vmul.f32 1.442695, %v937_v27 }
 0x6ac   : > { %v936_v45 = vpop.xlane.xlu0 %935 }
 0x6ad   : > { %1355 = vpow2.f32 %v939_v28  ;;  %v938_v29 = vsub.f32 %v927_v23, %v936_v45 }
 0x6af   : > { %v941_v30 = vmul.f32 1.442695, %v938_v29 }
 0x6b1   : > { %1357 = vpow2.f32 %v941_v30 }
 0x6b7   : > { %v1356_v31 = vpop.eup %1355 }
 0x6b8   : > { %v943_v1 = vsel %vm406_vm3, %v1356_v31, 0.0 }
 0x6b9   : > { %944 = vadd.xlane.f32.xlu0 %v943_v1 }
 0x6bb   : > { %v1358_v32 = vpop.eup %1357 }
 0x6bc   : > { %v946_v33 = vsel %vm410_vm4, %v1358_v32, 0.0  ;;  %v949_v34 = vpack.c.bf16 %v1358_v32, %v1356_v31 }
 0x6bd   : > { %947 = vadd.xlane.f32.xlu0 %v946_v33 }
 0x6be   : > { %1298 = vmatmul.mubr.msk.bf16.vlgmr.msra.gmra.mrb[20].mxu1 %vm406_vm3, %v949_v34 }
 0x6eb   : > { %v871_v35 = vpop.f32.mrb[16].mxu1 }
 0x6ec   : > { %v878_v36 = vadd.f32 %v871_v35, %v1535_v38  ;;  %v1287_v37 = vpop.f32.mrb[17].mxu1 }
 0x6ed   : > { %v874_v39 = vpop.f32.mrb[18].mxu1 }
 0x6ee   : > { %v879_v40 = vadd.f32 %v874_v39, %v1537_v41  ;;  %v1288_v42 = vpop.f32.mrb[19].mxu1 }
 0x746   : > { %v945_v46 = vpop.xlane.xlu0 %944 }
 0x747   : > { %1359 = vrcp.f32 %v945_v46 }
 0x74a   : > { %v948_v47 = vpop.xlane.xlu0 %947 }
 0x74b   : > { %1361 = vrcp.f32 %v948_v47 }
 0x751   : > { %v1360_v49 = vpop.eup %1359 }
 0x755   : > { %v1362_v38 = vpop.eup %1361 }
 0x791   : > { %v992_v48 = vpop.f32.mrb[20].mxu1 }
 0x792   : > { %v1299_v50 = vpop.f32.mrb[21].mxu1  ;;  %v1001_v52 = vmul.f32 %v1360_v49, %v992_v48 }
 0x793   : > { %v995_v51 = vpop.f32.mrb[22].mxu1 }
 0x794   : > { %v1002_v53 = vmul.f32 %v1362_v38, %v995_v51  ;;  %v1300_v41 = vpop.f32.mrb[23].mxu1 }
 0x796   : > { %v1003_v54 = vpack.c.bf16 %v1002_v53, %v1001_v52 }
 0x798   : > { %1304 = vmatmul.mubr.msk.bf16.vlgmr.msra.gmra.mrb[24].mxu0 %vm358_vm2, %v1003_v54 }
 0x86b   : > { %v1045_v55 = vpop.f32.mrb[24].mxu0 }
 0x86c   : > { %v1052_v57 = vadd.f32 %v1045_v55, %v878_v36  ;;  %v1305_v58 = vpop.f32.mrb[25].mxu0 }
 0x86d   : > { %v1048_v59 = vpop.f32.mrb[26].mxu0 }
 0x86e   : > { %v1061_v60 = vadd.f32 %v1193_v56, %v1052_v57  ;;  %v1053_v61 = vadd.f32 %v1048_v59, %v879_v40  ;;  %v1306_v16 = vpop.f32.mrb[27].mxu0 }
 0x870   : > { %v1062_v62 = vadd.f32 %v1193_v56, %v1053_v61  ;;  %v1063_v63 = vadd.f32 %v1061_v60, %v1459_v3 }
 0x872   : > { %v1067_v0 = vsel %vm306_vm1, %v1063_v63, 0.0  ;;  %v1064_v2 = vadd.f32 %v1062_v62, %v1461_v4 }
 0x873   : > { %1068 = vadd.xlane.f32.xlu0 %v1067_v0 }
 0x874   : > { %v1071_v5 = vsel %vm1070_vm7, %v1064_v2, 0.0 }
 0x877   : > { %1072 = vadd.xlane.f32.xlu0 %v1071_v5 }
 0x900   : > { %v1069_v6 = vpop.xlane.xlu0 %1068 }
 0x901   : > { %v1075_v7 = vmul.f32 0.03125, %v1069_v6 }
 0x903   : > { %v1077_v8 = vsub.f32 %v1063_v63, %v1075_v7 }
 0x904   : > { %v1073_v9 = vpop.xlane.xlu0 %1072 }
 0x905   : > { %v1076_v10 = vmul.f32 0.03125, %v1073_v9  ;;  %v1079_v11 = vmul.f32 %v1077_v8, %v1077_v8 }
 0x907   : > { %v1078_v12 = vsub.f32 %v1064_v2, %v1076_v10  ;;  %v1081_v13 = vsel %vm306_vm1, %v1079_v11, 0.0 }
 0x908   : > { %1082 = vadd.xlane.f32.xlu1 %v1081_v13 }
 0x909   : > { %v1080_v3 = vmul.f32 %v1078_v12, %v1078_v12 }
 0x90b   : > { %v1084_v15 = vsel %vm1070_vm7, %v1080_v3, 0.0 }
 0x90c   : > { %1085 = vadd.xlane.f32.xlu0 %v1084_v15 }
 0x995   : > { %v1083_v4 = vpop.xlane.xlu1 %1082 }
 0x996   : > { %v1087_v14 = vmul.f32 0.03125, %v1083_v4 }
 0x998   : > { %v1089_v17 = vadd.f32 1e-05, %v1087_v14 }
 0x999   : > { %v1086_v18 = vpop.xlane.xlu0 %1085 }
 0x99a   : > { %1363 = vrsqrt.f32 %v1089_v17  ;;  %v1088_v19 = vmul.f32 0.03125, %v1086_v18 }
 0x99c   : > { %v1090_v20 = vadd.f32 1e-05, %v1088_v19 }
 0x99e   : > { %1365 = vrsqrt.f32 %v1090_v20 }
 0x9a4   : > { %v1364_v21 = vpop.eup %1363 }
 0x9a5   : > { %v1093_v23 = vmul.f32 %v1364_v21, %v1077_v8 }
 0x9a7   : > { %v1101_v25 = vmul.f32 %v1194_v22, %v1093_v23 }
 0x9a8   : > { %v1366_v26 = vpop.eup %1365 }
 0x9a9   : > { %v1109_v27 = vadd.f32 %v1195_v24, %v1101_v25  ;;  %v1094_v28 = vmul.f32 %v1366_v26, %v1078_v12 }
 0x9ab   : > { %1111 = vst.msk [vmem:[%s278_s20] sm:$0xff] %vm306_vm1, %v1109_v27  ;;  %v1102_v45 = vmul.f32 %v1194_v22, %v1094_v28 }
 0x9ad   : > { %v1110_v29 = vadd.f32 %v1195_v24, %v1102_v45 }
 0x9af   : > { %1112 = vst.msk [vmem:[%s278_s20 + $0x8] sm:$0x1] %vm1070_vm7, %v1110_v29 }
 0x9b0 PF: > { %s17_s24 = sadd.s32 1, %s1373_s24  }
 0x9b1   : > { %p14_p4 = scmp.ge.s32.totalorder %s17_s24, 4  }
 0x9b3   :  { %16 = sbr.rel (!%p14_p4) target bundleno = 1 (0x1), region = 78 }

</bundles_post_ra>
